<compile_context>
chip_gen: v6e
topology: v6e:2x2x1
jax: 0.10.0
libtpu: 0.0.40
codegen_flags: <defaults>
</compile_context>

<pallas_src>
import functools

import jax
import jax.numpy as jnp
from jax.experimental import pallas as pl
from jax.experimental.pallas import tpu as pltpu


def _swarm_kernel(x_ref, wih_ref, bih_ref, whh_ref, whp_ref, wfh_ref, wfc_ref,
                  bf_ref, y_ref, xproj_ref, *,
                  n_hidden, n_iter, batch_tile, true_p, hoist_xproj):
    """SwarmLayer.forward (mask=None path) for `batch_tile` batch elements.

    x_ref    : (Bt, n_in, P) f32   channels-first, spatial flattened (P % 128 == 0)
    wih_ref  : (4nh, n_in) bf16    bih_ref : (4nh, 1) f32
    whh_ref  : (4nh, nh)  bf16     whp_ref : (4nh, nh) f32 (tiny pooled projection)
    wfh_ref  : (n_out, nh) bf16    wfc_ref : (n_out, nh) bf16    bf_ref: (n_out,1) f32
    y_ref    : (Bt, n_out, P) f32
    xproj_ref: (4nh, P) f32 VMEM scratch, reused per batch element (unused if hoisted)
    """
    nh = n_hidden
    P = x_ref.shape[-1]
    inv_p = 1.0 / float(true_p)

    needs_mask = (true_p != P)          # spatial padding present -> masked MEAN pool
    if needs_mask:
        lane_ok = jax.lax.broadcasted_iota(jnp.int32, (nh, P), 1) < true_p

    for b in range(batch_tile):         # tiny static unroll (<= 4)
        # Wih(x) is identical in every iteration: compute once.
        xproj = (jnp.dot(wih_ref[...], x_ref[b].astype(jnp.bfloat16),
                         preferred_element_type=jnp.float32) + bih_ref[...])
        if not hoist_xproj:
            # Too big to keep live in vregs across the unrolled loop -> park in VMEM.
            xproj_ref[...] = xproj

        # --- iteration 0 (hc is None): c = 0, tmp = Wih(x) -------------------
        c = jnp.tanh(xproj[3 * nh:4 * nh]) * jax.nn.sigmoid(xproj[0 * nh:1 * nh])
        h = jax.nn.sigmoid(xproj[2 * nh:3 * nh]) * jnp.tanh(c)

        # --- iterations 1 .. n_iter-1 ----------------------------------------
        def body(_, carry):
            h, c = carry
            # Whh: single (4nh, nh) @ (nh, P) bf16 MXU matmul, f32 accumulation.
            hh = jnp.dot(whh_ref[...], h.astype(jnp.bfloat16),
                         preferred_element_type=jnp.float32)
            # MEAN pooling: reduce h over lanes FIRST (XLU), then project the tiny
            # pooled vector with Whp (one 128-lane-wide MXU pass, then broadcast).
            h_src = jnp.where(lane_ok, h, 0.0) if needs_mask else h
            h_mean = jnp.sum(h_src, axis=1, keepdims=True) * inv_p      # (nh, 1)
            pool = jnp.dot(whp_ref[...], jnp.broadcast_to(h_mean, (nh, 128)),
                           preferred_element_type=jnp.float32)[:, 0:1]  # (4nh, 1)
            base = xproj if hoist_xproj else xproj_ref[...]
            tmp = base + hh + pool
            # Gate-by-gate update keeps vreg live ranges short.
            # TODO(synk): optional bf16 gate math on v6e/v7x EUP (keep f32 on v5e).
            c_new = (c * jax.nn.sigmoid(tmp[1 * nh:2 * nh])
                     + jnp.tanh(tmp[3 * nh:4 * nh])
                     * jax.nn.sigmoid(tmp[0 * nh:1 * nh]))
            h_new = jax.nn.sigmoid(tmp[2 * nh:3 * nh]) * jnp.tanh(c_new)
            return h_new, c_new

        h, c = jax.lax.fori_loop(1, n_iter, body, (h, c), unroll=True)

        # y = ffwd(cat(h, c, dim=channel)) without materializing the concat:
        # two small bf16 matmuls summed into the same f32 accumulator.
        y = (jnp.dot(wfh_ref[...], h.astype(jnp.bfloat16),
                     preferred_element_type=jnp.float32)
             + jnp.dot(wfc_ref[...], c.astype(jnp.bfloat16),
                       preferred_element_type=jnp.float32)
             + bf_ref[...])
        y_ref[b] = y.astype(y_ref.dtype)       # lane-dense store (P % 128 == 0)


def _round_up(v, m):
    return ((v + m - 1) // m) * m


def _scoped_vmem_cap_bytes():
    # Generation-aware cap (~half of physical VMEM): v5e/v6e have 128 MiB physical
    # VMEM, v7x has 64 MiB.  Stay well inside the scoped-VMEM regime.
    try:
        phys = int(getattr(pltpu.get_tpu_info(), "vmem_capacity_bytes", 64 << 20))
    except Exception:
        phys = 64 << 20
    return max(16 << 20, min(phys // 2, 64 << 20))


def swarm_layer_pallas(x, params, n_iter, *, batch_tile=None):
    """SwarmLayer forward (channel_first=True, MEAN pooling, dropout=0).

    x: (N, n_in, L) or (N, n_in, H, W) float32, channels-first.
    Returns the same layout with n_out channels.
    """
    # TODO(synk): user-supplied entity mask (mask != None) for MEAN pooling is not
    # implemented; only the internal spatial-padding mask is handled.
    spatial = x.shape[2:]
    N, Cin = int(x.shape[0]), int(x.shape[1])
    P_true = 1
    for d in spatial:
        P_true *= int(d)
    P = max(128, _round_up(P_true, 128))                 # lane-dense last dim
    xf = x.reshape(N, Cin, P_true).astype(jnp.float32)
    if P != P_true:
        xf = jnp.pad(xf, ((0, 0), (0, 0), (0, P - P_true)))

    wih, bih, whh, whp, wf, bf = params                  # stored (in, out)
    nh = whh.shape[0]
    n_out = wf.shape[1]

    # Re-orient the (tiny) weights at trace time so every 1x1 conv inside the kernel
    # is (Cout, Cin) @ (Cin, P).  MXU operands go to bf16 (f32 accumulation); the
    # pooled projection and the biases stay f32.
    wih_t = wih.T.astype(jnp.bfloat16)                   # (4nh, Cin)
    bih_t = bih.reshape(4 * nh, 1).astype(jnp.float32)   # (4nh, 1)
    whh_t = whh.T.astype(jnp.bfloat16)                   # (4nh, nh)
    whp_t = whp.T.astype(jnp.float32)                    # (4nh, nh)
    wf_h = wf[:nh].T.astype(jnp.bfloat16)                # (n_out, nh) -> applied to h
    wf_c = wf[nh:].T.astype(jnp.bfloat16)                # (n_out, nh) -> applied to c
    bf_t = bf.reshape(n_out, 1).astype(jnp.float32)      # (n_out, 1)

    # ---- batch tiling: keep per-step blocks small and lean on the cheap,
    # auto-pipelined grid; prefer an even grid with >= 2 steps (v7x megacore).
    if batch_tile is None:
        cap = 4
        cands = [d for d in range(1, min(cap, N) + 1) if N % d == 0]
        batch_tile = max(cands, key=lambda d: ((N // d) >= 2, (N // d) % 2 == 0, d))
    assert N % batch_tile == 0, "batch_tile must divide N"
    grid = (N // batch_tile,)

    # Hoist Wih(x) into vregs across the iteration loop only when it is small
    # (<= 16 f32 vregs); otherwise park it in a VMEM scratch.
    hoist_xproj = (4 * nh * P) <= 16 * 8 * 128

    f32 = 4
    weight_bytes = (2 * (4 * nh * Cin + 4 * nh * nh + 2 * n_out * nh)   # bf16 weights
                    + f32 * (4 * nh * nh + 4 * nh + n_out))             # f32 weights
    block_bytes = 2 * batch_tile * f32 * P * (Cin + n_out)              # dbl-buffered io
    scratch_bytes = f32 * 4 * nh * P
    vmem_est = weight_bytes + block_bytes + scratch_bytes
    vmem_limit = int(min(max(2 * vmem_est + (4 << 20), 8 << 20),
                         _scoped_vmem_cap_bytes()))

    kernel = functools.partial(
        _swarm_kernel, n_hidden=nh, n_iter=n_iter, batch_tile=batch_tile,
        true_p=P_true, hoist_xproj=hoist_xproj)

    def full(shape):
        return pl.BlockSpec(shape, lambda b: (0, 0))

    y = pl.pallas_call(
        kernel,
        out_shape=jax.ShapeDtypeStruct((N, n_out, P), jnp.float32),
        grid_spec=pltpu.PrefetchScalarGridSpec(
            num_scalar_prefetch=0,
            grid=grid,
            in_specs=[
                pl.BlockSpec((batch_tile, Cin, P), lambda b: (b, 0, 0)),
                full(wih_t.shape), full(bih_t.shape),
                full(whh_t.shape), full(whp_t.shape),
                full(wf_h.shape), full(wf_c.shape), full(bf_t.shape),
            ],
            out_specs=pl.BlockSpec((batch_tile, n_out, P), lambda b: (b, 0, 0)),
            scratch_shapes=[pltpu.VMEM((4 * nh, P), jnp.float32)],
        ),
        compiler_params=pltpu.CompilerParams(
            dimension_semantics=("parallel",),
            vmem_limit_bytes=vmem_limit),
    )(xf, wih_t, bih_t, whh_t, whp_t, wf_h, wf_c, bf_t)

    if P != P_true:
        y = y[:, :, :P_true]
    return y.reshape(N, n_out, *spatial)


def swarm_layer_ref(x, params, n_iter):
    """Pure-JAX f32 reference of the same forward pass (for correctness check)."""
    spatial = x.shape[2:]
    N, Cin = x.shape[0], x.shape[1]
    P = 1
    for d in spatial:
        P *= int(d)
    xf = jnp.transpose(x.reshape(N, Cin, P), (0, 2, 1))          # (N, P, Cin)
    wih, bih, whh, whp, wf, bf = params
    nh = whh.shape[0]
    n_out = wf.shape[1]
    xproj = xf @ wih + bih
    h = jnp.zeros((N, P, nh), jnp.float32)
    c = jnp.zeros((N, P, nh), jnp.float32)
    for it in range(n_iter):
        if it == 0:
            tmp = xproj
        else:
            tmp = xproj + h @ whh + (jnp.mean(h, axis=1, keepdims=True) @ whp)
        ig = jax.nn.sigmoid(tmp[..., 0 * nh:1 * nh])
        fg = jax.nn.sigmoid(tmp[..., 1 * nh:2 * nh])
        og = jax.nn.sigmoid(tmp[..., 2 * nh:3 * nh])
        d = jnp.tanh(tmp[..., 3 * nh:4 * nh])
        c = c * fg + d * ig
        h = og * jnp.tanh(c)
    y = jnp.concatenate([h, c], axis=-1) @ wf + bf
    return jnp.transpose(y, (0, 2, 1)).reshape(N, n_out, *spatial)


def init_params(key, n_in, n_hidden, n_out):
    """Deterministic parameter init (shapes follow SwarmLayer.__init__)."""
    k1, k2, k3, k4, k5, k6 = jax.random.split(key, 6)
    s = 0.1
    wih = s * jax.random.normal(k1, (n_in, 4 * n_hidden), jnp.float32)
    bih = s * jax.random.normal(k2, (1, 4 * n_hidden), jnp.float32)
    whh = s * jax.random.normal(k3, (n_hidden, 4 * n_hidden), jnp.float32)
    whp = s * jax.random.normal(k4, (n_hidden, 4 * n_hidden), jnp.float32)
    wf = s * jax.random.normal(k5, (2 * n_hidden, n_out), jnp.float32)
    bf = s * jax.random.normal(k6, (1, n_out), jnp.float32)
    return (wih, bih, whh, whp, wf, bf)


if __name__ == "__main__":
    key = jax.random.PRNGKey(0)
    kx1, kx2, kp = jax.random.split(key, 3)

    # SwarmLayer config matching MessagePassing.SWM: n_hidden=32, n_iter=4.
    n_in, n_hidden, n_out, n_iter = 4, 32, 8, 4
    params = init_params(kp, n_in, n_hidden, n_out)

    # (1) 2-D spatial layout, lane-aligned P = 16*16 = 256 (unpadded fast path).
    x2d = jax.random.normal(kx1, (2, n_in, 16, 16), jnp.float32)
    y2d = jax.block_until_ready(swarm_layer_pallas(x2d, params, n_iter))
    ref2d = swarm_layer_ref(x2d, params, n_iter)
    assert y2d.shape == (2, n_out, 16, 16)
    assert jnp.allclose(y2d, ref2d, rtol=2e-2, atol=2e-2), "2-D mismatch vs reference"

    # (2) 1-D spatial layout as used inside MessagePassing (entities on a line);
    #     a non-128-multiple length exercises the padded / masked-mean path.
    x1d = jax.random.normal(kx2, (2, n_in, 20), jnp.float32)
    y1d = jax.block_until_ready(swarm_layer_pallas(x1d, params, n_iter))
    ref1d = swarm_layer_ref(x1d, params, n_iter)
    assert y1d.shape == (2, n_out, 20)
    assert jnp.allclose(y1d, ref1d, rtol=2e-2, atol=2e-2), "1-D mismatch vs reference"

    print("KERNEL_OK")
</pallas_src>

<mosaic_0001>
module attributes {stable_mosaic.version = 11 : i64} {
  func.func @_swarm_kernel(%arg0: i32, %arg1: memref<1x4x256xf32, #tpu.memory_space<vmem>>, %arg2: memref<128x4xbf16, #tpu.memory_space<vmem>>, %arg3: memref<128x1xf32, #tpu.memory_space<vmem>>, %arg4: memref<128x32xbf16, #tpu.memory_space<vmem>>, %arg5: memref<128x32xf32, #tpu.memory_space<vmem>>, %arg6: memref<8x32xbf16, #tpu.memory_space<vmem>>, %arg7: memref<8x32xbf16, #tpu.memory_space<vmem>>, %arg8: memref<8x1xf32, #tpu.memory_space<vmem>>, %arg9: memref<1x8x256xf32, #tpu.memory_space<vmem>>, %arg10: memref<128x256xf32, #tpu.memory_space<vmem>>) attributes {dimension_semantics = [#tpu.dimension_semantics<parallel>], iteration_bounds = array<i64: 2>, scalar_prefetch = 0 : i64, scratch_operands = 1 : i64, tpu.core_type = #tpu.core_type<tc>, window_params = [{transform_indices = @transform_0, window_bounds = array<i64: 1, 4, 256>}, {pipeline_mode = #tpu.pipeline_mode<synchronous>, transform_indices = @transform_1, window_bounds = array<i64: 128, 4>}, {pipeline_mode = #tpu.pipeline_mode<synchronous>, transform_indices = @transform_2, window_bounds = array<i64: 128, 1>}, {pipeline_mode = #tpu.pipeline_mode<synchronous>, transform_indices = @transform_3, window_bounds = array<i64: 128, 32>}, {pipeline_mode = #tpu.pipeline_mode<synchronous>, transform_indices = @transform_4, window_bounds = array<i64: 128, 32>}, {pipeline_mode = #tpu.pipeline_mode<synchronous>, transform_indices = @transform_5, window_bounds = array<i64: 8, 32>}, {pipeline_mode = #tpu.pipeline_mode<synchronous>, transform_indices = @transform_6, window_bounds = array<i64: 8, 32>}, {pipeline_mode = #tpu.pipeline_mode<synchronous>, transform_indices = @transform_7, window_bounds = array<i64: 8, 1>}, {transform_indices = @transform_8, window_bounds = array<i64: 1, 8, 256>}]} {
    %c0 = arith.constant 0 : index
    %c0_0 = arith.constant 0 : index
    %0 = vector.load %arg2[%c0, %c0_0] : memref<128x4xbf16, #tpu.memory_space<vmem>>, vector<128x4xbf16>
    %c0_1 = arith.constant 0 : index
    %c0_2 = arith.constant 0 : index
    %c0_3 = arith.constant 0 : index
    %1 = vector.load %arg1[%c0_1, %c0_2, %c0_3] : memref<1x4x256xf32, #tpu.memory_space<vmem>>, vector<1x4x256xf32>
    %2 = vector.shape_cast %1 : vector<1x4x256xf32> to vector<4x256xf32>
    %3 = arith.truncf %2 : vector<4x256xf32> to vector<4x256xbf16>
    %cst = arith.constant dense<0.000000e+00> : vector<128x256xf32>
    %4 = tpu.matmul %0, %3, %cst {dimension_numbers = #tpu.dot_dimension_numbers<[1], [0], [0], [1], [0, 0, 1, 1], [], []>} : vector<128x4xbf16>, vector<4x256xbf16>, vector<128x256xf32> -> vector<128x256xf32>
    %c0_4 = arith.constant 0 : index
    %c0_5 = arith.constant 0 : index
    %5 = vector.load %arg3[%c0_4, %c0_5] : memref<128x1xf32, #tpu.memory_space<vmem>>, vector<128x1xf32>
    %6 = vector.broadcast %5 : vector<128x1xf32> to vector<128x256xf32>
    %7 = arith.addf %4, %6 : vector<128x256xf32>
    %c0_6 = arith.constant 0 : index
    %c0_7 = arith.constant 0 : index
    %8 = vector.load %arg10[%c0_6, %c0_7] : memref<128x256xf32, #tpu.memory_space<vmem>>, vector<128x256xf32>
    tpu.vector_store %arg10[%c0_6, %c0_7], %7 {strides = array<i32>} : memref<128x256xf32, #tpu.memory_space<vmem>>, vector<128x256xf32>,
    %9 = vector.extract_strided_slice %7 {offsets = [96, 0], sizes = [32, 256], strides = [1, 1]} : vector<128x256xf32> to vector<32x256xf32>
    %10 = math.tanh %9 : vector<32x256xf32>
    %11 = vector.extract_strided_slice %7 {offsets = [0, 0], sizes = [32, 256], strides = [1, 1]} : vector<128x256xf32> to vector<32x256xf32>
    %12 = arith.negf %11 : vector<32x256xf32>
    %13 = math.exp %12 : vector<32x256xf32>
    %cst_8 = arith.constant 1.000000e+00 : f32
    %14 = vector.broadcast %cst_8 : f32 to vector<32x256xf32>
    %15 = arith.addf %14, %13 : vector<32x256xf32>
    %16 = arith.divf %14, %15 : vector<32x256xf32>
    %17 = arith.mulf %10, %16 : vector<32x256xf32>
    %18 = vector.extract_strided_slice %7 {offsets = [64, 0], sizes = [32, 256], strides = [1, 1]} : vector<128x256xf32> to vector<32x256xf32>
    %19 = arith.negf %18 : vector<32x256xf32>
    %20 = math.exp %19 : vector<32x256xf32>
    %cst_9 = arith.constant 1.000000e+00 : f32
    %21 = vector.broadcast %cst_9 : f32 to vector<32x256xf32>
    %22 = arith.addf %21, %20 : vector<32x256xf32>
    %23 = arith.divf %21, %22 : vector<32x256xf32>
    %24 = math.tanh %17 : vector<32x256xf32>
    %25 = arith.mulf %23, %24 : vector<32x256xf32>
    %c0_i32 = arith.constant 0 : i32
    %c0_10 = arith.constant 0 : index
    %c0_11 = arith.constant 0 : index
    %26 = vector.load %arg4[%c0_10, %c0_11] : memref<128x32xbf16, #tpu.memory_space<vmem>>, vector<128x32xbf16>
    %27 = arith.truncf %25 : vector<32x256xf32> to vector<32x256xbf16>
    %cst_12 = arith.constant dense<0.000000e+00> : vector<128x256xf32>
    %28 = tpu.matmul %26, %27, %cst_12 {dimension_numbers = #tpu.dot_dimension_numbers<[1], [0], [0], [1], [0, 0, 1, 1], [], []>} : vector<128x32xbf16>, vector<32x256xbf16>, vector<128x256xf32> -> vector<128x256xf32>
    %cst_13 = arith.constant dense<0.000000e+00> : vector<32xf32>
    %29 = vector.multi_reduction <add>, %25, %cst_13 [1] : vector<32x256xf32> to vector<32xf32>
    %30 = vector.shape_cast %29 : vector<32xf32> to vector<32x1xf32>
    %cst_14 = arith.constant 3.906250e-03 : f32
    %31 = vector.broadcast %cst_14 : f32 to vector<32x1xf32>
    %32 = arith.mulf %30, %31 : vector<32x1xf32>
    %c0_15 = arith.constant 0 : index
    %c0_16 = arith.constant 0 : index
    %33 = vector.load %arg5[%c0_15, %c0_16] : memref<128x32xf32, #tpu.memory_space<vmem>>, vector<128x32xf32>
    %34 = vector.shape_cast %32 : vector<32x1xf32> to vector<32x1xf32>
    %35 = vector.broadcast %34 : vector<32x1xf32> to vector<32x128xf32>
    %cst_17 = arith.constant dense<0.000000e+00> : vector<128x128xf32>
    %36 = tpu.matmul %33, %35, %cst_17 {dimension_numbers = #tpu.dot_dimension_numbers<[1], [0], [0], [1], [0, 0, 1, 1], [], []>} : vector<128x32xf32>, vector<32x128xf32>, vector<128x128xf32> -> vector<128x128xf32>
    %37 = vector.extract_strided_slice %36 {offsets = [0, 0], sizes = [128, 1], strides = [1, 1]} : vector<128x128xf32> to vector<128x1xf32>
    %c0_18 = arith.constant 0 : index
    %c0_19 = arith.constant 0 : index
    %38 = vector.load %arg10[%c0_18, %c0_19] : memref<128x256xf32, #tpu.memory_space<vmem>>, vector<128x256xf32>
    %39 = arith.addf %38, %28 : vector<128x256xf32>
    %40 = vector.broadcast %37 : vector<128x1xf32> to vector<128x256xf32>
    %41 = arith.addf %39, %40 : vector<128x256xf32>
    %42 = vector.extract_strided_slice %41 {offsets = [32, 0], sizes = [32, 256], strides = [1, 1]} : vector<128x256xf32> to vector<32x256xf32>
    %43 = arith.negf %42 : vector<32x256xf32>
    %44 = math.exp %43 : vector<32x256xf32>
    %cst_20 = arith.constant 1.000000e+00 : f32
    %45 = vector.broadcast %cst_20 : f32 to vector<32x256xf32>
    %46 = arith.addf %45, %44 : vector<32x256xf32>
    %47 = arith.divf %45, %46 : vector<32x256xf32>
    %48 = arith.mulf %17, %47 : vector<32x256xf32>
    %49 = vector.extract_strided_slice %41 {offsets = [96, 0], sizes = [32, 256], strides = [1, 1]} : vector<128x256xf32> to vector<32x256xf32>
    %50 = math.tanh %49 : vector<32x256xf32>
    %51 = vector.extract_strided_slice %41 {offsets = [0, 0], sizes = [32, 256], strides = [1, 1]} : vector<128x256xf32> to vector<32x256xf32>
    %52 = arith.negf %51 : vector<32x256xf32>
    %53 = math.exp %52 : vector<32x256xf32>
    %cst_21 = arith.constant 1.000000e+00 : f32
    %54 = vector.broadcast %cst_21 : f32 to vector<32x256xf32>
    %55 = arith.addf %54, %53 : vector<32x256xf32>
    %56 = arith.divf %54, %55 : vector<32x256xf32>
    %57 = arith.mulf %50, %56 : vector<32x256xf32>
    %58 = arith.addf %48, %57 : vector<32x256xf32>
    %59 = vector.extract_strided_slice %41 {offsets = [64, 0], sizes = [32, 256], strides = [1, 1]} : vector<128x256xf32> to vector<32x256xf32>
    %60 = arith.negf %59 : vector<32x256xf32>
    %61 = math.exp %60 : vector<32x256xf32>
    %cst_22 = arith.constant 1.000000e+00 : f32
    %62 = vector.broadcast %cst_22 : f32 to vector<32x256xf32>
    %63 = arith.addf %62, %61 : vector<32x256xf32>
    %64 = arith.divf %62, %63 : vector<32x256xf32>
    %65 = math.tanh %58 : vector<32x256xf32>
    %66 = arith.mulf %64, %65 : vector<32x256xf32>
    %c1_i32 = arith.constant 1 : i32
    %c0_23 = arith.constant 0 : index
    %c0_24 = arith.constant 0 : index
    %67 = vector.load %arg4[%c0_23, %c0_24] : memref<128x32xbf16, #tpu.memory_space<vmem>>, vector<128x32xbf16>
    %68 = arith.truncf %66 : vector<32x256xf32> to vector<32x256xbf16>
    %cst_25 = arith.constant dense<0.000000e+00> : vector<128x256xf32>
    %69 = tpu.matmul %67, %68, %cst_25 {dimension_numbers = #tpu.dot_dimension_numbers<[1], [0], [0], [1], [0, 0, 1, 1], [], []>} : vector<128x32xbf16>, vector<32x256xbf16>, vector<128x256xf32> -> vector<128x256xf32>
    %cst_26 = arith.constant dense<0.000000e+00> : vector<32xf32>
    %70 = vector.multi_reduction <add>, %66, %cst_26 [1] : vector<32x256xf32> to vector<32xf32>
    %71 = vector.shape_cast %70 : vector<32xf32> to vector<32x1xf32>
    %cst_27 = arith.constant 3.906250e-03 : f32
    %72 = vector.broadcast %cst_27 : f32 to vector<32x1xf32>
    %73 = arith.mulf %71, %72 : vector<32x1xf32>
    %c0_28 = arith.constant 0 : index
    %c0_29 = arith.constant 0 : index
    %74 = vector.load %arg5[%c0_28, %c0_29] : memref<128x32xf32, #tpu.memory_space<vmem>>, vector<128x32xf32>
    %75 = vector.shape_cast %73 : vector<32x1xf32> to vector<32x1xf32>
    %76 = vector.broadcast %75 : vector<32x1xf32> to vector<32x128xf32>
    %cst_30 = arith.constant dense<0.000000e+00> : vector<128x128xf32>
    %77 = tpu.matmul %74, %76, %cst_30 {dimension_numbers = #tpu.dot_dimension_numbers<[1], [0], [0], [1], [0, 0, 1, 1], [], []>} : vector<128x32xf32>, vector<32x128xf32>, vector<128x128xf32> -> vector<128x128xf32>
    %78 = vector.extract_strided_slice %77 {offsets = [0, 0], sizes = [128, 1], strides = [1, 1]} : vector<128x128xf32> to vector<128x1xf32>
    %c0_31 = arith.constant 0 : index
    %c0_32 = arith.constant 0 : index
    %79 = vector.load %arg10[%c0_31, %c0_32] : memref<128x256xf32, #tpu.memory_space<vmem>>, vector<128x256xf32>
    %80 = arith.addf %79, %69 : vector<128x256xf32>
    %81 = vector.broadcast %78 : vector<128x1xf32> to vector<128x256xf32>
    %82 = arith.addf %80, %81 : vector<128x256xf32>
    %83 = vector.extract_strided_slice %82 {offsets = [32, 0], sizes = [32, 256], strides = [1, 1]} : vector<128x256xf32> to vector<32x256xf32>
    %84 = arith.negf %83 : vector<32x256xf32>
    %85 = math.exp %84 : vector<32x256xf32>
    %cst_33 = arith.constant 1.000000e+00 : f32
    %86 = vector.broadcast %cst_33 : f32 to vector<32x256xf32>
    %87 = arith.addf %86, %85 : vector<32x256xf32>
    %88 = arith.divf %86, %87 : vector<32x256xf32>
    %89 = arith.mulf %58, %88 : vector<32x256xf32>
    %90 = vector.extract_strided_slice %82 {offsets = [96, 0], sizes = [32, 256], strides = [1, 1]} : vector<128x256xf32> to vector<32x256xf32>
    %91 = math.tanh %90 : vector<32x256xf32>
    %92 = vector.extract_strided_slice %82 {offsets = [0, 0], sizes = [32, 256], strides = [1, 1]} : vector<128x256xf32> to vector<32x256xf32>
    %93 = arith.negf %92 : vector<32x256xf32>
    %94 = math.exp %93 : vector<32x256xf32>
    %cst_34 = arith.constant 1.000000e+00 : f32
    %95 = vector.broadcast %cst_34 : f32 to vector<32x256xf32>
    %96 = arith.addf %95, %94 : vector<32x256xf32>
    %97 = arith.divf %95, %96 : vector<32x256xf32>
    %98 = arith.mulf %91, %97 : vector<32x256xf32>
    %99 = arith.addf %89, %98 : vector<32x256xf32>
    %100 = vector.extract_strided_slice %82 {offsets = [64, 0], sizes = [32, 256], strides = [1, 1]} : vector<128x256xf32> to vector<32x256xf32>
    %101 = arith.negf %100 : vector<32x256xf32>
    %102 = math.exp %101 : vector<32x256xf32>
    %cst_35 = arith.constant 1.000000e+00 : f32
    %103 = vector.broadcast %cst_35 : f32 to vector<32x256xf32>
    %104 = arith.addf %103, %102 : vector<32x256xf32>
    %105 = arith.divf %103, %104 : vector<32x256xf32>
    %106 = math.tanh %99 : vector<32x256xf32>
    %107 = arith.mulf %105, %106 : vector<32x256xf32>
    %c2_i32 = arith.constant 2 : i32
    %c0_36 = arith.constant 0 : index
    %c0_37 = arith.constant 0 : index
    %108 = vector.load %arg4[%c0_36, %c0_37] : memref<128x32xbf16, #tpu.memory_space<vmem>>, vector<128x32xbf16>
    %109 = arith.truncf %107 : vector<32x256xf32> to vector<32x256xbf16>
    %cst_38 = arith.constant dense<0.000000e+00> : vector<128x256xf32>
    %110 = tpu.matmul %108, %109, %cst_38 {dimension_numbers = #tpu.dot_dimension_numbers<[1], [0], [0], [1], [0, 0, 1, 1], [], []>} : vector<128x32xbf16>, vector<32x256xbf16>, vector<128x256xf32> -> vector<128x256xf32>
    %cst_39 = arith.constant dense<0.000000e+00> : vector<32xf32>
    %111 = vector.multi_reduction <add>, %107, %cst_39 [1] : vector<32x256xf32> to vector<32xf32>
    %112 = vector.shape_cast %111 : vector<32xf32> to vector<32x1xf32>
    %cst_40 = arith.constant 3.906250e-03 : f32
    %113 = vector.broadcast %cst_40 : f32 to vector<32x1xf32>
    %114 = arith.mulf %112, %113 : vector<32x1xf32>
    %c0_41 = arith.constant 0 : index
    %c0_42 = arith.constant 0 : index
    %115 = vector.load %arg5[%c0_41, %c0_42] : memref<128x32xf32, #tpu.memory_space<vmem>>, vector<128x32xf32>
    %116 = vector.shape_cast %114 : vector<32x1xf32> to vector<32x1xf32>
    %117 = vector.broadcast %116 : vector<32x1xf32> to vector<32x128xf32>
    %cst_43 = arith.constant dense<0.000000e+00> : vector<128x128xf32>
    %118 = tpu.matmul %115, %117, %cst_43 {dimension_numbers = #tpu.dot_dimension_numbers<[1], [0], [0], [1], [0, 0, 1, 1], [], []>} : vector<128x32xf32>, vector<32x128xf32>, vector<128x128xf32> -> vector<128x128xf32>
    %119 = vector.extract_strided_slice %118 {offsets = [0, 0], sizes = [128, 1], strides = [1, 1]} : vector<128x128xf32> to vector<128x1xf32>
    %c0_44 = arith.constant 0 : index
    %c0_45 = arith.constant 0 : index
    %120 = vector.load %arg10[%c0_44, %c0_45] : memref<128x256xf32, #tpu.memory_space<vmem>>, vector<128x256xf32>
    %121 = arith.addf %120, %110 : vector<128x256xf32>
    %122 = vector.broadcast %119 : vector<128x1xf32> to vector<128x256xf32>
    %123 = arith.addf %121, %122 : vector<128x256xf32>
    %124 = vector.extract_strided_slice %123 {offsets = [32, 0], sizes = [32, 256], strides = [1, 1]} : vector<128x256xf32> to vector<32x256xf32>
    %125 = arith.negf %124 : vector<32x256xf32>
    %126 = math.exp %125 : vector<32x256xf32>
    %cst_46 = arith.constant 1.000000e+00 : f32
    %127 = vector.broadcast %cst_46 : f32 to vector<32x256xf32>
    %128 = arith.addf %127, %126 : vector<32x256xf32>
    %129 = arith.divf %127, %128 : vector<32x256xf32>
    %130 = arith.mulf %99, %129 : vector<32x256xf32>
    %131 = vector.extract_strided_slice %123 {offsets = [96, 0], sizes = [32, 256], strides = [1, 1]} : vector<128x256xf32> to vector<32x256xf32>
    %132 = math.tanh %131 : vector<32x256xf32>
    %133 = vector.extract_strided_slice %123 {offsets = [0, 0], sizes = [32, 256], strides = [1, 1]} : vector<128x256xf32> to vector<32x256xf32>
    %134 = arith.negf %133 : vector<32x256xf32>
    %135 = math.exp %134 : vector<32x256xf32>
    %cst_47 = arith.constant 1.000000e+00 : f32
    %136 = vector.broadcast %cst_47 : f32 to vector<32x256xf32>
    %137 = arith.addf %136, %135 : vector<32x256xf32>
    %138 = arith.divf %136, %137 : vector<32x256xf32>
    %139 = arith.mulf %132, %138 : vector<32x256xf32>
    %140 = arith.addf %130, %139 : vector<32x256xf32>
    %141 = vector.extract_strided_slice %123 {offsets = [64, 0], sizes = [32, 256], strides = [1, 1]} : vector<128x256xf32> to vector<32x256xf32>
    %142 = arith.negf %141 : vector<32x256xf32>
    %143 = math.exp %142 : vector<32x256xf32>
    %cst_48 = arith.constant 1.000000e+00 : f32
    %144 = vector.broadcast %cst_48 : f32 to vector<32x256xf32>
    %145 = arith.addf %144, %143 : vector<32x256xf32>
    %146 = arith.divf %144, %145 : vector<32x256xf32>
    %147 = math.tanh %140 : vector<32x256xf32>
    %148 = arith.mulf %146, %147 : vector<32x256xf32>
    %c0_49 = arith.constant 0 : index
    %c0_50 = arith.constant 0 : index
    %149 = vector.load %arg6[%c0_49, %c0_50] : memref<8x32xbf16, #tpu.memory_space<vmem>>, vector<8x32xbf16>
    %150 = arith.truncf %148 : vector<32x256xf32> to vector<32x256xbf16>
    %cst_51 = arith.constant dense<0.000000e+00> : vector<8x256xf32>
    %151 = tpu.matmul %149, %150, %cst_51 {dimension_numbers = #tpu.dot_dimension_numbers<[1], [0], [0], [1], [0, 0, 1, 1], [], []>} : vector<8x32xbf16>, vector<32x256xbf16>, vector<8x256xf32> -> vector<8x256xf32>
    %c0_52 = arith.constant 0 : index
    %c0_53 = arith.constant 0 : index
    %152 = vector.load %arg7[%c0_52, %c0_53] : memref<8x32xbf16, #tpu.memory_space<vmem>>, vector<8x32xbf16>
    %153 = arith.truncf %140 : vector<32x256xf32> to vector<32x256xbf16>
    %cst_54 = arith.constant dense<0.000000e+00> : vector<8x256xf32>
    %154 = tpu.matmul %152, %153, %cst_54 {dimension_numbers = #tpu.dot_dimension_numbers<[1], [0], [0], [1], [0, 0, 1, 1], [], []>} : vector<8x32xbf16>, vector<32x256xbf16>, vector<8x256xf32> -> vector<8x256xf32>
    %155 = arith.addf %151, %154 : vector<8x256xf32>
    %c0_55 = arith.constant 0 : index
    %c0_56 = arith.constant 0 : index
    %156 = vector.load %arg8[%c0_55, %c0_56] : memref<8x1xf32, #tpu.memory_space<vmem>>, vector<8x1xf32>
    %157 = vector.broadcast %156 : vector<8x1xf32> to vector<8x256xf32>
    %158 = arith.addf %155, %157 : vector<8x256xf32>
    %c0_57 = arith.constant 0 : index
    %c0_58 = arith.constant 0 : index
    %c0_59 = arith.constant 0 : index
    %159 = vector.load %arg9[%c0_57, %c0_58, %c0_59] : memref<1x8x256xf32, #tpu.memory_space<vmem>>, vector<1x8x256xf32>
    %160 = vector.shape_cast %159 : vector<1x8x256xf32> to vector<8x256xf32>
    %161 = vector.shape_cast %158 : vector<8x256xf32> to vector<1x8x256xf32>
    tpu.vector_store %arg9[%c0_57, %c0_58, %c0_59], %161 {strides = array<i32>} : memref<1x8x256xf32, #tpu.memory_space<vmem>>, vector<1x8x256xf32>,
    return
  }
  func.func @transform_0(%arg0: i32) -> (i32, i32, i32) {
    %c0_i32 = arith.constant 0 : i32
    %c0_i32_0 = arith.constant 0 : i32
    %c0_i32_1 = arith.constant 0 : i32
    return %arg0, %c0_i32, %c0_i32_0 : i32, i32, i32
  }
  func.func @transform_1(%arg0: i32) -> (i32, i32) {
    %c0_i32 = arith.constant 0 : i32
    %c0_i32_0 = arith.constant 0 : i32
    %c0_i32_1 = arith.constant 0 : i32
    return %c0_i32, %c0_i32_0 : i32, i32
  }
  func.func @transform_2(%arg0: i32) -> (i32, i32) {
    %c0_i32 = arith.constant 0 : i32
    %c0_i32_0 = arith.constant 0 : i32
    %c0_i32_1 = arith.constant 0 : i32
    return %c0_i32, %c0_i32_0 : i32, i32
  }
  func.func @transform_3(%arg0: i32) -> (i32, i32) {
    %c0_i32 = arith.constant 0 : i32
    %c0_i32_0 = arith.constant 0 : i32
    %c0_i32_1 = arith.constant 0 : i32
    return %c0_i32, %c0_i32_0 : i32, i32
  }
  func.func @transform_4(%arg0: i32) -> (i32, i32) {
    %c0_i32 = arith.constant 0 : i32
    %c0_i32_0 = arith.constant 0 : i32
    %c0_i32_1 = arith.constant 0 : i32
    return %c0_i32, %c0_i32_0 : i32, i32
  }
  func.func @transform_5(%arg0: i32) -> (i32, i32) {
    %c0_i32 = arith.constant 0 : i32
    %c0_i32_0 = arith.constant 0 : i32
    %c0_i32_1 = arith.constant 0 : i32
    return %c0_i32, %c0_i32_0 : i32, i32
  }
  func.func @transform_6(%arg0: i32) -> (i32, i32) {
    %c0_i32 = arith.constant 0 : i32
    %c0_i32_0 = arith.constant 0 : i32
    %c0_i32_1 = arith.constant 0 : i32
    return %c0_i32, %c0_i32_0 : i32, i32
  }
  func.func @transform_7(%arg0: i32) -> (i32, i32) {
    %c0_i32 = arith.constant 0 : i32
    %c0_i32_0 = arith.constant 0 : i32
    %c0_i32_1 = arith.constant 0 : i32
    return %c0_i32, %c0_i32_0 : i32, i32
  }
  func.func @transform_8(%arg0: i32) -> (i32, i32, i32) {
    %c0_i32 = arith.constant 0 : i32
    %c0_i32_0 = arith.constant 0 : i32
    %c0_i32_1 = arith.constant 0 : i32
    return %arg0, %c0_i32, %c0_i32_0 : i32, i32, i32
  }
}

</mosaic_0001>

<bundles_post_ra>
// kernel: tpu_custom_call.1
= control target key start
LH: loop header
LB: loop body
LE: loop exit
PB: predicated region body
PF: predicated region fallthrough
CT: control target
= control target key end

     0   :  { %13 = vsyncpa [#allocation4], 0  ;;  %s5040_s0 = inlined_call_operand.vmem [shape: f32[2,4,256], index: 0, kind: input, shape index: {}]   ;;  %s5041_s1 = inlined_call_operand.vmem [shape: bf16[128,4], index: 1, kind: input, shape index: {}]   ;;  %s5042_s2 = inlined_call_operand.vmem [shape: f32[128,1], index: 2, kind: input, shape index: {}]   ;;  %s5043_s3 = inlined_call_operand.vmem [shape: bf16[128,32], index: 3, kind: input, shape index: {}]   ;;  %s5044_s4 = inlined_call_operand.vmem [shape: f32[128,32], index: 4, kind: input, shape index: {}]   ;;  %s5045_s5 = inlined_call_operand.vmem [shape: bf16[8,32], index: 5, kind: input, shape index: {}]   ;;  %s5046_s6 = inlined_call_operand.vmem [shape: bf16[8,32], index: 6, kind: input, shape index: {}]   ;;  %s5047_s7 = inlined_call_operand.vmem [shape: f32[8,1], index: 7, kind: input, shape index: {}]   ;;  %s5048_s8 = inlined_call_operand.hbm [shape: f32[2,8,256], index: 8, kind: output, shape index: {}]  }
   0x1   :  { %15 = vsyncpa [#allocation4 + $0x1], 0  ;;  %s3999_s27 = smov 0   ;;  %s4001_s28 = smov 0  }
   0x2   :  { %s4003_s29 = smov 0   ;;  %s4005_s30 = smov 0  }
   0x3 LB: > { %s4020_s9 = sadd.s32 4294967295, %s3950_s30   ;;  %s2969_s10 = sadd.s32 4294967294, %s3950_s30   ;;  %s3950_s30 = sphi %s4005_s30, %s5247_s30   ;;  %s3946_s29 = sphi %s4003_s29, %s5246_s29   ;;  %s3942_s28 = sphi %s4001_s28, %s5245_s28   ;;  %s3938_s27 = sphi %s3999_s27, %s5244_s27  }
   0x4   : > { %s4024_s11 = sadd.s32 1, %s3950_s30   ;;  %s201_s12 = sadd.s32 1, %s3946_s29 }
   0x5   : > { %s198_s13 = ssub.s32 %s3950_s30, %s4024_s11  ;;  %p211_p0 = scmp.ne.s32.totalorder %s3946_s29, %s3942_s28 }
   0x6   : > { %p199_p1 = scmp.eq.s32.totalorder %s198_s13, 0  ;;  %p212_p2 = scmp.eq.s32.totalorder %s4020_s9, 1 }
   0x7   : > { %p217_p3 = scmp.ne.s32.totalorder %s3942_s28, %s3938_s27  ;;  %p218_p4 = scmp.eq.s32.totalorder %s2969_s10, 1 }
   0x8   : > { %s4035_s14 = scalar_select %p199_p1, %s3946_s29, %s201_s12  }
   0x9   : > { %p4037_p5 = por %p212_p2, %p211_p0  ;;  %p4041_p6 = por %p218_p4, %p217_p3 }
   0xa   : > { %p2972_p7 = scmp.ge.s32.totalorder %s3950_s30, 1  ;;  %p265_p8 = scmp.lt.s32.totalorder %s3950_s30, 3 }
   0xc   : > { %p266_p9 = pnand %p2972_p7, %p265_p8 }
   0xe   : > { %269 = sbr.rel (%p266_p9) target bundleno = 2198 (0x896), region = 52 }
  0x13   : > { %p299_p10 = scmp.lt.s32.totalorder %s4020_s9, 1  ;;  %v5049_v0 = vmov 0   ;;  %vm488_vm0 = vcmask 1041408   ;;  %v328_v4 = vld [vmem:[%s5042_s2 + $0x8] sm:$0xff]  ;;  %v330_v7 = vld [vmem:[%s5042_s2 + $0x18] sm:$0xff]  ;;  %v327_v8 = vld [vmem:[%s5042_s2] sm:$0xff] }
  0x14   : > { %527 = vmatprep.mubr.bf16.mxu0 %v5049_v0  ;;  %597 = vmatprep.mubr.bf16.mxu1 %v5049_v0  ;;  %v3371_v9 = vld [vmem:[%s5041_s1] sm:$0xff]   ;;  %v3375_v10 = vld [vmem:[%s5041_s1 + $0x38] sm:$0xff]   ;;  %v329_v11 = vld [vmem:[%s5042_s2 + $0x10] sm:$0xff]  ;;  %vm463_vm1 = vcmask 31744   ;;  %vm828_vm2 = vcmask 261120   ;;  %s296_s10 = sand.u32 1, %s3942_s28  }
  0x15   : > { %s300_s17 = scalar_select %p299_p10, %s4020_s9, 1  ;;  %3369 = vset.pattern.permute.xlu1 %v5049_v0  ;;  %3368 = vset.pattern.permute.xlu0 %v5049_v0  ;;  %v337_v12 = vld [vmem:[%s5042_s2 + $0x50] sm:$0xff]  ;;  %v338_v13 = vld [vmem:[%s5042_s2 + $0x58] sm:$0xff]  ;;  %v336_v14 = vld [vmem:[%s5042_s2 + $0x48] sm:$0xff] }
  0x16   : > { %350 = vperm.xlu1 %3369, %v328_v4   ;;  %360 = vperm.xlu0 %3368, %v330_v7   ;;  %v3372_v15 = vld [vmem:[%s5041_s1 + $0x8] sm:$0xff]   ;;  %v342_v16 = vld [vmem:[%s5042_s2 + $0x78] sm:$0xff]  ;;  %v335_v17 = vld [vmem:[%s5042_s2 + $0x40] sm:$0xff]  ;;  %s2973_s12 = sshll.u32 %s296_s10, 4  ;;  %s3169_s13 = sshll.u32 %s4020_s9, 8 }
  0x17   : > { %s3168_s18 = sshll.u32 %s300_s17, 3  ;;  %v341_v18 = vld [vmem:[%s5042_s2 + $0x70] sm:$0xff]  ;;  %v339_v19 = vld [vmem:[%s5042_s2 + $0x60] sm:$0xff]  ;;  %v340_v21 = vld [vmem:[%s5042_s2 + $0x68] sm:$0xff]  ;;  %s298_s17 = scalar_lea.vmem [#allocation3], %s2973_s12 }
  0x18   : > { %s303_s21 = scalar_lea.vmem %s5040_s0, %s3168_s18  ;;  %v3373_v20 = vld [vmem:[%s5041_s1 + $0x10] sm:$0xff]   ;;  %v3374_v22 = vld [vmem:[%s5041_s1 + $0x18] sm:$0xff]   ;;  %v3376_v23 = vld [vmem:[%s5041_s1 + $0x20] sm:$0xff]   ;;  %s2910_s18 = sshll.u32 %s298_s17, 4  ;;  %s2911_s18 = int_to_ptr.vmem [resolvable:$true] %s2910_s18 }
  0x19   : > { %v321_v1 = vld [vmem:[%s303_s21] sm:$0xff]  ;;  %v3377_v24 = vld [vmem:[%s5041_s1 + $0x28] sm:$0xff]   ;;  %v3378_v25 = vld [vmem:[%s5041_s1 + $0x30] sm:$0xff]   ;;  %s5005_s21 = scalar_lea.hbm %s5048_s8, %s3169_s13  ;;  %s2896_s22 = scalar_lea.sflag [#allocation4], %s296_s10 }
  0x1a   : > { %v323_v2 = vcombine.high %v321_v1, %v321_v1  ;;  %v325_v3 = vpack.c.bf16 %v321_v1, %v321_v1  ;;  %345 = vperm.xlu1 %3369, %v327_v8   ;;  %355 = vperm.xlu0 %3368, %v329_v11   ;;  %s3890_s23 = scalar_lea.vmem %s2911_s18, 256  ;;  %s3953_s9 = smov [#allocation3]  }
  0x1b   : > { %p3891_p11 = scmp.ne.s32.totalorder %s2911_s18, %s3890_s23  ;;  %s3894_s24 = sshll.u32 %s3953_s9, 4  ;;  %s3895_s24 = int_to_ptr.vmem [resolvable:$false] %s3894_s24 }
  0x1c   : > { %v326_v5 = vpack.c.bf16 %v323_v2, %v323_v2  ;;  %v490_v6 = vsel %vm488_vm0, %v325_v3, 0  ;;  %s3896_s25 = scalar_lea.vmem %s3895_s24, 512  ;;  %p3897_p0 = scmp.lt.s32.totalorder %s2911_s18, %s3895_s24 }
  0x1d   : > { %p3892_p12 = pnand %p3891_p11, %p4037_p5  ;;  %p3898_p1 = scmp.lt.s32.totalorder %s3896_s25, %s3890_s23 }
  0x1e   : > { %2984 = vmatprep.subr.msk.bf16.mxu0 %vm488_vm0, %v326_v5  ;;  %3326 = vmatprep.subr.msk.bf16.mxu1 %vm488_vm0, %v326_v5 }
  0x1f   : > { %510 = vmatpush1.bf16.msra.mxu0 %v490_v6  ;;  %3327 = vmatpush1.bf16.msra.mxu1 %v490_v6  ;;  %p3893_p13 = pneg %p3892_p12  ;;  %p3899_p2 = por %p3898_p1, %p3897_p0 }
  0x20   : > { %395 = vperm.xlu1 %3369, %v337_v12   ;;  %400 = vperm.xlu0 %3368, %v338_v13  }
  0x21   : > { %p3900_p3 = pnand %p3899_p2, %p3893_p13 }
  0x22   : > { %2985 = vmatmul.mubr.msk.bf16.vlgmr.msra.gmra.mxu0 %vm463_vm1, %v3371_v9  ;;  %2992 = vmatmul.mubr.msk.bf16.vlgmr.msra.gmra.mxu1 %vm463_vm1, %v3375_v10 }
  0x23   : > { %537 = vmatprep.mubr.bf16.mxu0 %v5049_v0  ;;  %885 = vmatprep.mubr.bf16.mxu1 %v5049_v0 }
  0x24   : > { %390 = vperm.xlu1 %3369, %v336_v14   ;;  %420 = vperm.xlu0 %3368, %v342_v16  }
  0x28   : > { %385 = vperm.xlu1 %3369, %v335_v17   ;;  %415 = vperm.xlu0 %3368, %v341_v18  }
  0x2a   : > { %2986 = vmatmul.mubr.msk.bf16.gmra.mxu0 %vm463_vm1, %v3372_v15 }
  0x2b   : > { %547 = vmatprep.mubr.bf16.mxu0 %v5049_v0 }
  0x2c   : > { %405 = vperm.xlu1 %3369, %v339_v19   ;;  %410 = vperm.xlu0 %3368, %v340_v21  }
  0x32   : > { %2987 = vmatmul.mubr.msk.bf16.gmra.mxu0 %vm463_vm1, %v3373_v20 }
  0x33   : > { %557 = vmatprep.mubr.bf16.mxu0 %v5049_v0 }
  0x3a   : > { %2988 = vmatmul.mubr.msk.bf16.gmra.mxu0 %vm463_vm1, %v3374_v22 }
  0x3b   : > { %567 = vmatprep.mubr.bf16.mxu0 %v5049_v0 }
  0x42   : > { %2989 = vmatmul.mubr.msk.bf16.gmra.mxu0 %vm463_vm1, %v3376_v23 }
  0x43   : > { %577 = vmatprep.mubr.bf16.mxu0 %v5049_v0 }
  0x4a   : > { %2990 = vmatmul.mubr.msk.bf16.gmra.mxu0 %vm463_vm1, %v3377_v24 }
  0x4b   : > { %587 = vmatprep.mubr.bf16.mxu0 %v5049_v0 }
  0x52   : > { %2991 = vmatmul.mubr.msk.bf16.gmra.mxu0 %vm463_vm1, %v3378_v25 }
  0x91   : > { %v351_v27 = vpop.permute.xlu1 %350  ;;  %v361_v29 = vpop.permute.xlu0 %360 }
  0x95   : > { %v346_v32 = vpop.permute.xlu1 %345  ;;  %v356_v34 = vpop.permute.xlu0 %355 }
  0x9b   : > { %v4142_v44 = vpop.permute.xlu0 %400  ;;  %v396_v60 = vpop.permute.xlu1 %395 }
  0x9f   : > { %v421_v55 = vpop.permute.xlu0 %420  ;;  %v391_v6 = vpop.permute.xlu1 %390 }
  0xa3   : > { %v416_v62 = vpop.permute.xlu0 %415  ;;  %v386_v24 = vpop.permute.xlu1 %385 }
  0xe2   : > { %v529_v26 = vpop.f32.mrf.mxu0  ;;  %v599_v52 = vpop.f32.mrf.mxu1 }
  0xe3   : > { %v4131_v36 = vadd.f32 %v529_v26, %v346_v32  ;;  %v4170_v4 = vadd.f32 %v599_v52, %v416_v62 }
  0xe4   : > { %v531_v28 = vpop.f32.mrf.mxu0  ;;  %v601_v57 = vpop.f32.mrf.mxu1 }
  0xe5   : > { %v4135_v39 = vadd.f32 %v531_v28, %v346_v32  ;;  %v2993_v42 = vmul.f32 -1.442695, %v4131_v36  ;;  %v4174_v7 = vadd.f32 %v601_v57, %v416_v62 }
  0xe6   : > { %v533_v30 = vpop.f32.mrf.mxu0  ;;  %v603_v63 = vpop.f32.mrf.mxu1 }
  0xe7   : > { %v2994_v48 = vmul.f32 -1.442695, %v4135_v39  ;;  %3387 = vpow2.f32 %v2993_v42  ;;  %v4159_v58 = vadd.f32 %v533_v30, %v351_v27  ;;  %5122 = vst [vmem:[#allocation9_spill] sm:$0xff] %v4174_v7  ;;  %v4176_v10 = vadd.f32 %v603_v63, %v421_v55 }
  0xe8   : > { %v535_v31 = vpop.f32.mrf.mxu0  ;;  %v605_v8 = vpop.f32.mrf.mxu1 }
  0xe9   : > { %v2995_v1 = vmul.f32 -1.442695, %v4159_v58  ;;  %v4168_v3 = vadd.f32 %v535_v31, %v351_v27  ;;  %v4180_v15 = vadd.f32 %v605_v8, %v421_v55 }
  0xea   : > { %v539_v33 = vpop.f32.mrf.mxu0 }
  0xeb   : > { %v4133_v37 = vadd.f32 %v539_v33, %v356_v34  ;;  %v2996_v13 = vmul.f32 -1.442695, %v4168_v3 }
  0xec   : > { %v541_v35 = vpop.f32.mrf.mxu0 }
  0xed   : > { %v4137_v40 = vadd.f32 %v541_v35, %v356_v34  ;;  %v2997_v45 = vmul.f32 -1.442695, %v4133_v37 }
  0xee   : > { %v543_v38 = vpop.f32.mrf.mxu0 }
  0xef   : > { %5119 = vst [vmem:[#allocation6_spill] sm:$0xff] %v4137_v40  ;;  %v4140_v43 = vadd.f32 %v543_v38, %v361_v29  ;;  %v2998_v49 = vmul.f32 -1.442695, %v4137_v40  ;;  %3389 = vpow2.f32 %v2997_v45 }
  0xf0   : > { %v545_v41 = vpop.f32.mrf.mxu0  ;;  %3391 = vpow2.f32 %v2994_v48 }
  0xf1   : > { %5120 = vst [vmem:[#allocation7_spill] sm:$0xff] %v4140_v43  ;;  %v4145_v46 = vadd.f32 %v545_v41, %v361_v29  ;;  %v2999_v51 = vmul.f32 -1.442695, %v4140_v43  ;;  %3393 = vpow2.f32 %v2998_v49 }
  0xf2   : > { %v4147_v47 = vpop.f32.mrf.mxu0 }
  0xf3   : > { %5121 = vst [vmem:[#allocation8_spill] sm:$0xff] %v4145_v46  ;;  %v3000_v53 = vmul.f32 -1.442695, %v4145_v46  ;;  %3395 = vpow2.f32 %v2999_v51 }
  0xf4   : > { %v4151_v50 = vpop.f32.mrf.mxu0  ;;  %v3388_v9 = vpop.eup %3387 }
  0xf5   : > { %3397 = vpow2.f32 %v3000_v53  ;;  %v672_v18 = vadd.f32 1.0, %v3388_v9 }
  0xf6   : > { %v4155_v54 = vpop.f32.mrf.mxu0  ;;  %3399 = vpow2.f32 %v2995_v1 }
  0xf7   : > { %3401 = vtanh.f32 %v4170_v4 }
  0xf8   : > { %v4157_v56 = vpop.f32.mrf.mxu0  ;;  %3403 = vtanh.f32 %v4174_v7 }
  0xf9   : > { %3405 = vtanh.f32 %v4176_v10 }
  0xfa   : > { %v4161_v59 = vpop.f32.mrf.mxu0  ;;  %3407 = vpow2.f32 %v2996_v13 }
  0xfb   : > { %3409 = vtanh.f32 %v4180_v15 }
  0xfc   : > { %v4163_v61 = vpop.f32.mrf.mxu0  ;;  %v3390_v12 = vpop.eup %3389  ;;  %3411 = vrcp.f32 %v672_v18 }
  0xfd   : > { %v3392_v14 = vpop.eup %3391  ;;  %v676_v20 = vadd.f32 1.0, %v3390_v12 }
  0xfe   : > { %v4166_v2 = vpop.f32.mrf.mxu0  ;;  %v3394_v17 = vpop.eup %3393  ;;  %v673_v23 = vadd.f32 1.0, %v3392_v14 }
  0xff   : > { %v677_v25 = vadd.f32 1.0, %v3394_v17  ;;  %3413 = vrcp.f32 %v676_v20 }
 0x100   : > { %v4172_v5 = vpop.f32.mrf.mxu0  ;;  %v3396_v19 = vpop.eup %3395  ;;  %3415 = vrcp.f32 %v673_v23 }
 0x101   : > { %v678_v28 = vadd.f32 1.0, %v3396_v19  ;;  %3417 = vrcp.f32 %v677_v25  ;;  %v411_v19 = vpop.permute.xlu0 %410 }
 0x102   : > { %v569_v11 = vpop.f32.mrf.mxu0  ;;  %v3398_v22 = vpop.eup %3397 }
 0x103   : > { %v679_v29 = vadd.f32 1.0, %v3398_v22  ;;  %3419 = vrcp.f32 %v678_v28  ;;  %v3400_v48 = vpop.eup %3399  ;;  %v4203_v57 = vadd.f32 %v569_v11, %v386_v24 }
 0x104   : > { %v571_v16 = vpop.f32.mrf.mxu0  ;;  %v3402_v55 = vpop.eup %3401  ;;  %v674_v1 = vadd.f32 1.0, %v3400_v48 }
 0x105   : > { %v4185_v26 = vadd.f32 %v571_v16, %v386_v24  ;;  %3421 = vrcp.f32 %v679_v29  ;;  %5124 = vst [vmem:[#allocation11_spill] sm:$0xff] %v4203_v57  ;;  %v3404_v63 = vpop.eup %3403  ;;  %v3001_v17 = vmul.f32 -1.442695, %v4203_v57 }
 0x106   : > { %v573_v21 = vpop.f32.mrf.mxu0  ;;  %v3406_v9 = vpop.eup %3405 }
 0x107   : > { %5123 = vst [vmem:[#allocation10_spill] sm:$0xff] %v4185_v26  ;;  %v4187_v30 = vadd.f32 %v573_v21, %v391_v6  ;;  %v3002_v33 = vmul.f32 -1.442695, %v4185_v26  ;;  %v3408_v14 = vpop.eup %3407 }
 0x108   : > { %v575_v27 = vpop.f32.mrf.mxu0  ;;  %v3410_v16 = vpop.eup %3409  ;;  %v675_v22 = vadd.f32 1.0, %v3408_v14 }
 0x109   : > { %v4192_v34 = vadd.f32 %v575_v27, %v391_v6  ;;  %v3003_v42 = vmul.f32 -1.442695, %v4187_v30  ;;  %v406_v6 = vpop.permute.xlu1 %405  ;;  %v3412_v18 = vpop.eup %3411 }
 0x10a   : > { %v579_v31 = vpop.f32.mrf.mxu0 }
 0x10b   : > { %v4189_v32 = vadd.f32 %v579_v31, %v396_v60  ;;  %v3004_v52 = vmul.f32 -1.442695, %v4192_v34 }
 0x10c   : > { %v581_v35 = vpop.f32.mrf.mxu0  ;;  %v3414_v21 = vpop.eup %3413 }
 0x10d   : > { %v3005_v38 = vmul.f32 -1.442695, %v4189_v32  ;;  %v4195_v41 = vadd.f32 %v581_v35, %v396_v60  ;;  %v3416_v24 = vpop.eup %3415  ;;  %v4222_v31 = vmul.f32 %v3414_v21, %v3402_v55 }
 0x10e   : > { %v583_v45 = vpop.f32.mrf.mxu0  ;;  %v3418_v27 = vpop.eup %3417 }
 0x10f   : > { %3423 = vpow2.f32 %v3005_v38  ;;  %v3006_v49 = vmul.f32 -1.442695, %v4195_v41  ;;  %v4200_v51 = vadd.f32 %v583_v45, %v4142_v44  ;;  %5129 = vst [vmem:[#allocation16_spill] sm:$0xff] %v4222_v31  ;;  %v4225_v38 = vmul.f32 %v3418_v27, %v3404_v63 }
 0x110   : > { %3425 = vpow2.f32 %v3002_v33  ;;  %v585_v53 = vpop.f32.mrf.mxu0  ;;  %v3420_v29 = vpop.eup %3419 }
 0x111   : > { %3427 = vpow2.f32 %v3006_v49  ;;  %v3007_v60 = vmul.f32 -1.442695, %v4200_v51  ;;  %v4207_v62 = vadd.f32 %v585_v53, %v4142_v44  ;;  %5130 = vst [vmem:[#allocation17_spill] sm:$0xff] %v4225_v38  ;;  %v4228_v49 = vmul.f32 %v3420_v29, %v3406_v9 }
 0x112   : > { %3429 = vpow2.f32 %v3003_v42  ;;  %v589_v8 = vpop.f32.mrf.mxu0  ;;  %v3422_v33 = vpop.eup %3421 }
 0x113   : > { %3431 = vpow2.f32 %v3007_v60  ;;  %v3008_v12 = vmul.f32 -1.442695, %v4207_v62  ;;  %v4210_v13 = vadd.f32 %v589_v8, %v406_v6  ;;  %5131 = vst [vmem:[#allocation18_spill] sm:$0xff] %v4228_v49  ;;  %v4231_v55 = vmul.f32 %v3422_v33, %v3410_v16 }
 0x114   : > { %3433 = vpow2.f32 %v3004_v52  ;;  %v591_v11 = vpop.f32.mrf.mxu0 }
 0x115   : > { %5125 = vst [vmem:[#allocation12_spill] sm:$0xff] %v4210_v13  ;;  %3435 = vpow2.f32 %v3008_v12  ;;  %v4213_v44 = vadd.f32 %v591_v11, %v406_v6  ;;  %5132 = vst [vmem:[#allocation19_spill] sm:$0xff] %v4231_v55 }
 0x116   : > { %3437 = vrcp.f32 %v674_v1  ;;  %v593_v20 = vpop.f32.mrf.mxu0 }
 0x117   : > { %5126 = vst [vmem:[#allocation13_spill] sm:$0xff] %v4213_v44  ;;  %3439 = vtanh.f32 %v4210_v13  ;;  %v4216_v23 = vadd.f32 %v593_v20, %v411_v19 }
 0x118   : > { %3441 = vtanh.f32 %v4213_v44  ;;  %v595_v25 = vpop.f32.mrf.mxu0 }
 0x119   : > { %5127 = vst [vmem:[#allocation14_spill] sm:$0xff] %v4216_v23  ;;  %3443 = vpow2.f32 %v3001_v17  ;;  %v4219_v28 = vadd.f32 %v595_v25, %v411_v19 }
 0x11a   : > { %3445 = vtanh.f32 %v4216_v23 }
 0x11b   : > { %5128 = vst [vmem:[#allocation15_spill] sm:$0xff] %v4219_v28  ;;  %3447 = vrcp.f32 %v675_v22 }
 0x11c   : > { %v3424_v35 = vpop.eup %3423  ;;  %3449 = vtanh.f32 %v4219_v28 }
 0x11d   : > { %v3426_v42 = vpop.eup %3425  ;;  %v732_v45 = vadd.f32 1.0, %v3424_v35  ;;  %3451 = vtanh.f32 %v4222_v31 }
 0x11e   : > { %v3428_v48 = vpop.eup %3427  ;;  %v729_v8 = vadd.f32 1.0, %v3426_v42 }
 0x11f   : > { %v3430_v52 = vpop.eup %3429  ;;  %3453 = vrcp.f32 %v732_v45  ;;  %v733_v53 = vadd.f32 1.0, %v3428_v48 }
 0x120   : > { %v3432_v60 = vpop.eup %3431  ;;  %3455 = vtanh.f32 %v4225_v38  ;;  %v730_v14 = vadd.f32 1.0, %v3430_v52 }
 0x121   : > { %v3434_v1 = vpop.eup %3433  ;;  %3457 = vrcp.f32 %v733_v53  ;;  %v734_v6 = vadd.f32 1.0, %v3432_v60 }
 0x122   : > { %v3436_v63 = vpop.eup %3435  ;;  %3459 = vtanh.f32 %v4228_v49  ;;  %v731_v17 = vadd.f32 1.0, %v3434_v1 }
 0x123   : > { %v3438_v12 = vpop.eup %3437  ;;  %3461 = vrcp.f32 %v734_v6  ;;  %v735_v9 = vadd.f32 1.0, %v3436_v63 }
 0x124   : > { %v3440_v11 = vpop.eup %3439  ;;  %3463 = vtanh.f32 %v4231_v55 }
 0x125   : > { %v3442_v19 = vpop.eup %3441  ;;  %3465 = vrcp.f32 %v735_v9  ;;  %v4237_v22 = vmul.f32 %v3440_v11, %v3412_v18 }
 0x126   : > { %v3444_v20 = vpop.eup %3443  ;;  %3467 = vrcp.f32 %v729_v8  ;;  %v4235_v16 = vmul.f32 %v3442_v19, %v3416_v24 }
 0x127   : > { %v3446_v21 = vpop.eup %3445  ;;  %3469 = vrcp.f32 %v730_v14  ;;  %5134 = vst [vmem:[#allocation21_spill] sm:$0xff] %v4237_v22  ;;  %v728_v33 = vadd.f32 1.0, %v3444_v20 }
 0x128   : > { %5133 = vst [vmem:[#allocation20_spill] sm:$0xff] %v4235_v16  ;;  %v3448_v25 = vpop.eup %3447  ;;  %3471 = vrcp.f32 %v731_v17  ;;  %v4239_v27 = vmul.f32 %v3446_v21, %v3438_v12 }
 0x129   : > { %v3450_v29 = vpop.eup %3449  ;;  %3473 = vtanh.f32 %v4235_v16 }
 0x12a   : > { %5135 = vst [vmem:[#allocation22_spill] sm:$0xff] %v4239_v27  ;;  %v4242_v35 = vmul.f32 %v3450_v29, %v3448_v25  ;;  %3475 = vtanh.f32 %v4239_v27  ;;  %v3452_v42 = vpop.eup %3451 }
 0x12b   : > { %3477 = vtanh.f32 %v4237_v22 }
 0x12c   : > { %5136 = vst [vmem:[#allocation23_spill] sm:$0xff] %v4242_v35  ;;  %v3454_v24 = vpop.eup %3453  ;;  %3479 = vtanh.f32 %v4242_v35 }
 0x12d   : > { %v3456_v18 = vpop.eup %3455  ;;  %3481 = vrcp.f32 %v728_v33  ;;  %v764_v52 = vmul.f32 %v3454_v24, %v3452_v42 }
 0x12e   : > { %v3458_v45 = vpop.eup %3457 }
 0x12f   : > { %v3460_v48 = vpop.eup %3459  ;;  %v765_v53 = vmul.f32 %v3458_v45, %v3456_v18 }
 0x130   : > { %v3462_v60 = vpop.eup %3461 }
 0x131   : > { %v3464_v1 = vpop.eup %3463  ;;  %v972_v6 = vadd.f32 %v765_v53, %v764_v52  ;;  %v766_v8 = vmul.f32 %v3462_v60, %v3460_v48 }
 0x132   : > { %v3466_v63 = vpop.eup %3465 }
 0x133   : > { %v3468_v12 = vpop.eup %3467  ;;  %973 = vadd.xlane.f32.xlu1 %v972_v6  ;;  %v767_v14 = vmul.f32 %v3466_v63, %v3464_v1  ;;  %v786_v21 = vpack.c.bf16 %v766_v8, %v764_v52  ;;  %v4250_v52 = vld [vmem:[%s5043_s3] sm:$0xff]   ;;  %v334_v63 = vld [vmem:[%s5042_s2 + $0x38] sm:$0xff] }
 0x134   : > { %v3470_v9 = vpop.eup %3469  ;;  %5137 = vst [vmem:[#allocation24_spill] sm:$0xff] %v4250_v52 }
 0x135   : > { %v3472_v11 = vpop.eup %3471  ;;  %v975_v17 = vadd.f32 %v767_v14, %v766_v8  ;;  %v787_v19 = vpack.c.bf16 %v767_v14, %v765_v53  ;;  %v332_v8 = vld [vmem:[%s5042_s2 + $0x28] sm:$0xff]  ;;  %v331_v14 = vld [vmem:[%s5042_s2 + $0x20] sm:$0xff] }
 0x136   : > { %v3474_v20 = vpop.eup %3473 }
 0x137   : > { %v3476_v25 = vpop.eup %3475  ;;  %976 = vadd.xlane.f32.xlu0 %v975_v17  ;;  %865 = vmatprep.subr.bf16.mxu1 %v787_v19  ;;  %v761_v45 = vmul.f32 %v3474_v20, %v3468_v12  ;;  %v4264_v12 = vld [vmem:[%s5043_s3 + $0x8] sm:$0xff]   ;;  %v333_v17 = vld [vmem:[%s5042_s2 + $0x30] sm:$0xff]  ;;  %v4293_v19 = vld [vmem:[%s5043_s3 + $0x18] sm:$0xff]  }
 0x138   : > { %v3478_v29 = vpop.eup %3477  ;;  %866 = vmatpush1.bf16.msra.mxu1 %v786_v21  ;;  %v762_v42 = vmul.f32 %v3476_v25, %v3470_v9  ;;  %5138 = vst [vmem:[#allocation25_spill] sm:$0xff] %v4264_v12  ;;  %v4275_v9 = vld [vmem:[%s5043_s3 + $0x10] sm:$0xff]   ;;  %5141 = vst [vmem:[#allocation28_spill] sm:$0xff] %v4293_v19  ;;  %v4301_v20 = vld [vmem:[%s5043_s3 + $0x20] sm:$0xff]  }
 0x139   : > { %v3480_v33 = vpop.eup %3479  ;;  %5139 = vst [vmem:[#allocation26_spill] sm:$0xff] %v4275_v9  ;;  %5142 = vst [vmem:[#allocation29_spill] sm:$0xff] %v4301_v20  ;;  %v4309_v21 = vld [vmem:[%s5043_s3 + $0x28] sm:$0xff]   ;;  %v4317_v25 = vld [vmem:[%s5043_s3 + $0x30] sm:$0xff]  }
 0x13a   : > { %v3482_v24 = vpop.eup %3481  ;;  %v763_v18 = vmul.f32 %v3480_v33, %v3472_v11  ;;  %v4280_v11 = vld [vmem:[%s5044_s4] sm:$0xff]  ;;  %5143 = vst [vmem:[#allocation30_spill] sm:$0xff] %v4309_v21  ;;  %5144 = vst [vmem:[#allocation31_spill] sm:$0xff] %v4317_v25 }
 0x13b   : > { %v760_v48 = vmul.f32 %v3482_v24, %v3478_v29  ;;  %5140 = vst [vmem:[#allocation27_spill] sm:$0xff] %v4280_v11  ;;  %3238 = vmatprep.mubr.msk.f32.mxu0 %vm828_vm2, %v4280_v11  ;;  %v4325_v29 = vld [vmem:[%s5043_s3 + $0x38] sm:$0xff]  }
 0x13c   : > { %v969_v60 = vadd.f32 %v763_v18, %v762_v42  ;;  %v785_v6 = vpack.c.bf16 %v763_v18, %v761_v45  ;;  %5145 = vst [vmem:[#allocation32_spill] sm:$0xff] %v4325_v29 }
 0x13d   : > { %v784_v1 = vpack.c.bf16 %v762_v42, %v760_v48  ;;  %v966_v53 = vadd.f32 %v761_v45, %v760_v48 }
 0x13e   : > { %970 = vadd.xlane.f32.xlu0 %v969_v60  ;;  %867 = vmatprep.subr.bf16.mxu1 %v785_v6 }
 0x13f   : > { %868 = vmatpush1.bf16.msra.mxu1 %v784_v1  ;;  %v4333_v1 = vld [vmem:[%s5044_s4 + $0x8] sm:$0xff] }
 0x140   : > { %5146 = vst [vmem:[#allocation33_spill] sm:$0xff] %v4333_v1 }
 0x142   : > { %967 = vadd.xlane.f32.xlu0 %v966_v53  ;;  %3017 = vmatmul.mubr.msk.bf16.vlgmr.msra.gmra.mxu1 %vm828_vm2, %v4250_v52  ;;  %v4338_v53 = vld [vmem:[%s5044_s4 + $0x10] sm:$0xff] }
 0x143   : > { %895 = vmatprep.mubr.bf16.mxu1 %v5049_v0  ;;  %5147 = vst [vmem:[#allocation34_spill] sm:$0xff] %v4338_v53 }
 0x144   : > { %380 = vperm.xlu1 %3369, %v334_v63   ;;  %v4347_v63 = vld [vmem:[%s5044_s4 + $0x18] sm:$0xff] }
 0x145   : > { %5148 = vst [vmem:[#allocation35_spill] sm:$0xff] %v4347_v63 }
 0x148   : > { %370 = vperm.xlu1 %3369, %v332_v8   ;;  %v4352_v8 = vld [vmem:[%s5044_s4 + $0x20] sm:$0xff] }
 0x149   : > { %5149 = vst [vmem:[#allocation36_spill] sm:$0xff] %v4352_v8 }
 0x14a   : > { %3018 = vmatmul.mubr.msk.bf16.gmra.mxu1 %vm828_vm2, %v4264_v12 }
 0x14b   : > { %905 = vmatprep.mubr.bf16.mxu1 %v5049_v0 }
 0x14c   : > { %365 = vperm.xlu1 %3369, %v331_v14   ;;  %v4361_v14 = vld [vmem:[%s5044_s4 + $0x28] sm:$0xff] }
 0x14d   : > { %5150 = vst [vmem:[#allocation37_spill] sm:$0xff] %v4361_v14 }
 0x152   : > { %3019 = vmatmul.mubr.msk.bf16.gmra.mxu1 %vm828_vm2, %v4275_v9 }
 0x153   : > { %915 = vmatprep.mubr.bf16.mxu1 %v5049_v0 }
 0x158   : > { %375 = vperm.xlu0 %3368, %v333_v17   ;;  %v4366_v17 = vld [vmem:[%s5044_s4 + $0x30] sm:$0xff] }
 0x159   : > { %5151 = vst [vmem:[#allocation38_spill] sm:$0xff] %v4366_v17 }
 0x15a   : > { %3020 = vmatmul.mubr.msk.bf16.gmra.mxu1 %vm828_vm2, %v4293_v19 }
 0x15b   : > { %925 = vmatprep.mubr.bf16.mxu1 %v5049_v0 }
 0x162   : > { %3021 = vmatmul.mubr.msk.bf16.gmra.mxu1 %vm828_vm2, %v4301_v20 }
 0x163   : > { %935 = vmatprep.mubr.bf16.mxu1 %v5049_v0 }
 0x16a   : > { %3022 = vmatmul.mubr.msk.bf16.gmra.mxu1 %vm828_vm2, %v4309_v21 }
 0x16b   : > { %945 = vmatprep.mubr.bf16.mxu1 %v5049_v0 }
 0x172   : > { %3023 = vmatmul.mubr.msk.bf16.gmra.mxu1 %vm828_vm2, %v4317_v25 }
 0x173   : > { %955 = vmatprep.mubr.bf16.mxu1 %v5049_v0 }
 0x17a   : > { %3024 = vmatmul.mubr.msk.bf16.gmra.mxu1 %vm828_vm2, %v4325_v29 }
 0x17b   : > { %1595 = vmatprep.mubr.bf16.mxu1 %v5049_v0  ;;  %v4431_v0 = vld [vmem:[%s5044_s4 + $0x78] sm:$0xff] }
 0x17c   : > { %5160 = vst [vmem:[#allocation47_spill] sm:$0xff] %v4431_v0 }
 0x1bc   : > { %v974_v33 = vpop.xlane.xlu1 %973 }
 0x1bd   : > { %v980_v18 = vmul.f32 0.00390625, %v974_v33  ;;  %v4375_v33 = vld [vmem:[%s5044_s4 + $0x38] sm:$0xff] }
 0x1be   : > { %5152 = vst [vmem:[#allocation39_spill] sm:$0xff] %v4375_v33 }
 0x1c0   : > { %v977_v42 = vpop.xlane.xlu0 %976  ;;  %v381_v20 = vpop.permute.xlu1 %380 }
 0x1c1   : > { %v981_v24 = vmul.f32 0.00390625, %v977_v42  ;;  %v4380_v42 = vld [vmem:[%s5044_s4 + $0x40] sm:$0xff]  ;;  %v4477_v7 = vadd.f32 %v4166_v2, %v381_v20 }
 0x1c2   : > { %5153 = vst [vmem:[#allocation40_spill] sm:$0xff] %v4380_v42 }
 0x1c3   : > { %3230 = vmatprep.subr.mxu0 %v981_v24 }
 0x1c4   : > { %3231 = vmatpush3.msra.mxu0 %v981_v24  ;;  %v4389_v24 = vld [vmem:[%s5044_s4 + $0x48] sm:$0xff]  ;;  %v371_v12 = vpop.permute.xlu1 %370 }
 0x1c5   : > { %3232 = vmatprep.subr.mxu0 %v980_v18  ;;  %5154 = vst [vmem:[#allocation41_spill] sm:$0xff] %v4389_v24  ;;  %v4466_v49 = vadd.f32 %v4155_v54, %v371_v12 }
 0x1c6   : > { %3233 = vmatpush3.msra.mxu0 %v980_v18  ;;  %v4394_v18 = vld [vmem:[%s5044_s4 + $0x50] sm:$0xff] }
 0x1c7   : > { %v971_v45 = vpop.xlane.xlu0 %970  ;;  %5155 = vst [vmem:[#allocation42_spill] sm:$0xff] %v4394_v18 }
 0x1c8   : > { %v979_v48 = vmul.f32 0.00390625, %v971_v45  ;;  %v4403_v45 = vld [vmem:[%s5044_s4 + $0x58] sm:$0xff]  ;;  %v366_v16 = vpop.permute.xlu1 %365 }
 0x1c9   : > { %5156 = vst [vmem:[#allocation43_spill] sm:$0xff] %v4403_v45 }
 0x1ca   : > { %3234 = vmatprep.subr.mxu0 %v979_v48 }
 0x1cb   : > { %3235 = vmatpush3.msra.mxu0 %v979_v48  ;;  %v968_v60 = vpop.xlane.xlu0 %967  ;;  %v4408_v48 = vld [vmem:[%s5044_s4 + $0x60] sm:$0xff] }
 0x1cc   : > { %v978_v6 = vmul.f32 0.00390625, %v968_v60  ;;  %5157 = vst [vmem:[#allocation44_spill] sm:$0xff] %v4408_v48  ;;  %v4417_v60 = vld [vmem:[%s5044_s4 + $0x68] sm:$0xff] }
 0x1cd   : > { %5158 = vst [vmem:[#allocation45_spill] sm:$0xff] %v4417_v60 }
 0x1ce   : > { %3236 = vmatprep.subr.mxu0 %v978_v6 }
 0x1cf   : > { %3237 = vmatpush3.msra.mxu0 %v978_v6  ;;  %v4422_v6 = vld [vmem:[%s5044_s4 + $0x70] sm:$0xff] }
 0x1d0   : > { %3239 = vmatmul.mubr.msk.f32.vlgmr.msra.gmra.mxu0 %vm828_vm2, %v4333_v1  ;;  %5159 = vst [vmem:[#allocation46_spill] sm:$0xff] %v4422_v6 }
 0x1d1   : > { %3241 = vmatprep.mubr.msk.f32.mxu0 %vm828_vm2, %v4338_v53 }
 0x1d3   : > { %v376_v38 = vpop.permute.xlu0 %375 }
 0x1d4   : > { %3242 = vmatmul.mubr.msk.f32.gmra.mxu0 %vm828_vm2, %v4347_v63 }
 0x1d5   : > { %3244 = vmatprep.mubr.msk.f32.mxu0 %vm828_vm2, %v4352_v8 }
 0x1d8   : > { %3245 = vmatmul.mubr.msk.f32.gmra.mxu0 %vm828_vm2, %v4361_v14 }
 0x1d9   : > { %3247 = vmatprep.mubr.msk.f32.mxu0 %vm828_vm2, %v4366_v17 }
 0x1dc   : > { %3248 = vmatmul.mubr.msk.f32.gmra.mxu0 %vm828_vm2, %v4375_v33 }
 0x1dd   : > { %3250 = vmatprep.mubr.msk.f32.mxu0 %vm828_vm2, %v4380_v42 }
 0x1e0   : > { %3251 = vmatmul.mubr.msk.f32.gmra.mxu0 %vm828_vm2, %v4389_v24 }
 0x1e1   : > { %3253 = vmatprep.mubr.msk.f32.mxu0 %vm828_vm2, %v4394_v18 }
 0x1e4   : > { %3254 = vmatmul.mubr.msk.f32.gmra.mxu0 %vm828_vm2, %v4403_v45 }
 0x1e5   : > { %3256 = vmatprep.mubr.msk.f32.mxu0 %vm828_vm2, %v4408_v48 }
 0x1e8   : > { %3257 = vmatmul.mubr.msk.f32.gmra.mxu0 %vm828_vm2, %v4417_v60 }
 0x1e9   : > { %3259 = vmatprep.mubr.msk.f32.mxu0 %vm828_vm2, %v4422_v6 }
 0x1ec   : > { %3260 = vmatmul.mubr.msk.f32.gmra.mxu0 %vm828_vm2, %v4431_v0 }
 0x1ed   : > { %3270 = vmatprep.mubr.msk.f32.mxu0 %vm828_vm2, %v4280_v11 }
 0x290   : > { %v3240_v48 = vpop.f32.mrf.mxu0 }
 0x292   : > { %v1112_v45 = vpop.f32.mrf.mxu0 }
 0x294   : > { %v3243_v18 = vpop.f32.mrf.mxu0 }
 0x295   : > { %1272 = vperm.xlu1 %3369, %v3243_v18  }
 0x296   : > { %v1122_v24 = vpop.f32.mrf.mxu0 }
 0x297   : > { %1267 = vperm.xlu0 %3368, %v1122_v24  }
 0x298   : > { %v3246_v60 = vpop.f32.mrf.mxu0 }
 0x299   : > { %1282 = vperm.xlu1 %3369, %v3246_v60  }
 0x29a   : > { %v1132_v6 = vpop.f32.mrf.mxu0 }
 0x29c   : > { %v3249_v42 = vpop.f32.mrf.mxu0 }
 0x29d   : > { %1292 = vperm.xlu0 %3368, %v3249_v42   ;;  %v4437_v42 = vpop.f32.mrf.mxu1 }
 0x29e   : > { %v1142_v33 = vpop.f32.mrf.mxu0 }
 0x29f   : > { %1287 = vperm.xlu1 %3369, %v1142_v33   ;;  %v4439_v33 = vpop.f32.mrf.mxu1 }
 0x2a0   : > { %v3252_v17 = vpop.f32.mrf.mxu0 }
 0x2a1   : > { %1262 = vperm.xlu0 %3368, %v3240_v48   ;;  %v4441_v48 = vpop.f32.mrf.mxu1 }
 0x2a2   : > { %v1152_v14 = vpop.f32.mrf.mxu0 }
 0x2a3   : > { %1277 = vperm.xlu1 %3369, %v1132_v6  }
 0x2a4   : > { %v3255_v0 = vpop.f32.mrf.mxu0 }
 0x2a5   : > { %1257 = vperm.xlu0 %3368, %v1112_v45   ;;  %v4443_v45 = vpop.f32.mrf.mxu1 }
 0x2a6   : > { %v1162_v8 = vpop.f32.mrf.mxu0 }
 0x2a7   : > { %v897_v60 = vpop.f32.mrf.mxu1 }
 0x2a8   : > { %v3258_v63 = vpop.f32.mrf.mxu0  ;;  %v1227_v27 = vadd.f32 %v897_v60, %v4133_v37  ;;  %v4480_v60 = vadd.f32 %v4172_v5, %v381_v20 }
 0x2a9   : > { %1302 = vperm.xlu0 %3368, %v3252_v17   ;;  %1322 = vperm.xlu1 %3369, %v3258_v63   ;;  %v899_v17 = vpop.f32.mrf.mxu1 }
 0x2aa   : > { %v1172_v18 = vpop.f32.mrf.mxu0  ;;  %v1228_v44 = vadd.f32 %v899_v17, %v4137_v40 }
 0x2ab   : > { %v901_v63 = vpop.f32.mrf.mxu1 }
 0x2ac   : > { %v3261_v53 = vpop.f32.mrf.mxu0  ;;  %v1229_v31 = vadd.f32 %v901_v63, %v4140_v43 }
 0x2ad   : > { %1312 = vperm.xlu0 %3368, %v3255_v0   ;;  %1332 = vperm.xlu1 %3369, %v3261_v53   ;;  %v903_v6 = vpop.f32.mrf.mxu1 }
 0x2ae   : > { %v1182_v24 = vpop.f32.mrf.mxu0  ;;  %v1230_v55 = vadd.f32 %v903_v6, %v4145_v46 }
 0x2af   : > { %v4445_v1 = vpop.f32.mrf.mxu1 }
 0x2b1   : > { %1307 = vperm.xlu0 %3368, %v1162_v8   ;;  %1327 = vperm.xlu1 %3369, %v1182_v24   ;;  %v4447_v0 = vpop.f32.mrf.mxu1 }
 0x2b3   : > { %v911_v53 = vpop.f32.mrf.mxu1 }
 0x2b4   : > { %v1233_v57 = vadd.f32 %v911_v53, %v4466_v49  ;;  %v4498_v53 = vadd.f32 %v4147_v47, %v366_v16 }
 0x2b5   : > { %1297 = vperm.xlu0 %3368, %v1152_v14   ;;  %1317 = vperm.xlu1 %3369, %v1172_v18   ;;  %v913_v8 = vpop.f32.mrf.mxu1 }
 0x2b7   : > { %v917_v24 = vpop.f32.mrf.mxu1 }
 0x2b9   : > { %v919_v11 = vpop.f32.mrf.mxu1 }
 0x2bb   : > { %v921_v14 = vpop.f32.mrf.mxu1 }
 0x2bc   : > { %v1237_v5 = vadd.f32 %v921_v14, %v4477_v7  ;;  %v1225_v14 = vadd.f32 %v4441_v48, %v4159_v58 }
 0x2bd   : > { %v923_v18 = vpop.f32.mrf.mxu1 }
 0x2bf   : > { %v4449_v29 = vpop.f32.mrf.mxu1 }
 0x2c0   : > { %5161 = vst [vmem:[#allocation48_spill] sm:$0xff] %v4449_v29  ;;  %v4473_v29 = vadd.f32 %v4157_v56, %v371_v12 }
 0x2c1   : > { %v4451_v25 = vpop.f32.mrf.mxu1 }
 0x2c2   : > { %5162 = vst [vmem:[#allocation49_spill] sm:$0xff] %v4451_v25  ;;  %5163 = vst [vmem:[#allocation50_spill] sm:$0xff] %v4473_v29  ;;  %v1234_v17 = vadd.f32 %v913_v8, %v4473_v29  ;;  %v4501_v8 = vadd.f32 %v4151_v50, %v366_v16 }
 0x2c3   : > { %v4453_v21 = vpop.f32.mrf.mxu1 }
 0x2c4   : > { %v1232_v47 = vadd.f32 %v4447_v0, %v4501_v8  ;;  %v1223_v0 = vadd.f32 %v4437_v42, %v4131_v36 }
 0x2c5   : > { %v4455_v19 = vpop.f32.mrf.mxu1 }
 0x2c7   : > { %v4457_v9 = vpop.f32.mrf.mxu1 }
 0x2c9   : > { %v4459_v52 = vpop.f32.mrf.mxu1 }
 0x2cb   : > { %v4461_v22 = vpop.f32.mrf.mxu1 }
 0x2cd   : > { %v4470_v13 = vpop.f32.mrf.mxu1 }
 0x310   : > { %v1273_v35 = vpop.permute.xlu1 %1272 }
 0x311   : > { %v1341_v25 = vadd.f32 %v1273_v35, %v1229_v31  ;;  %v1342_v26 = vadd.f32 %v1273_v35, %v1230_v55  ;;  %v4483_v55 = vpop.f32.mrf.mxu1 }
 0x312   : > { %v1268_v63 = vpop.permute.xlu0 %1267 }
 0x313   : > { %v3055_v43 = vmul.f32 -1.442695, %v1341_v25  ;;  %v3056_v6 = vmul.f32 -1.442695, %v1342_v26  ;;  %v1339_v46 = vadd.f32 %v1268_v63, %v1227_v27  ;;  %v1340_v54 = vadd.f32 %v1268_v63, %v1228_v44 }
 0x314   : > { %v1283_v31 = vpop.permute.xlu1 %1282  ;;  %v4486_v25 = vadd.f32 %v4161_v59, %v376_v38  ;;  %v4489_v26 = vadd.f32 %v4163_v61, %v376_v38  ;;  %v1238_v44 = vadd.f32 %v923_v18, %v4480_v60  ;;  %v4495_v59 = vpop.f32.mrf.mxu1 }
 0x315   : > { %3483 = vpow2.f32 %v3055_v43  ;;  %v3053_v56 = vmul.f32 -1.442695, %v1339_v46  ;;  %v3054_v35 = vmul.f32 -1.442695, %v1340_v54  ;;  %v1345_v12 = vadd.f32 %v1283_v31, %v1233_v57 }
 0x316   : > { %3485 = vpow2.f32 %v3056_v6  ;;  %v1346_v2 = vadd.f32 %v1283_v31, %v1234_v17  ;;  %v1235_v20 = vadd.f32 %v917_v24, %v4486_v25  ;;  %v1236_v57 = vadd.f32 %v919_v11, %v4489_v26  ;;  %v4511_v16 = vpop.f32.mrf.mxu1 }
 0x317   : > { %3487 = vpow2.f32 %v3053_v56  ;;  %v3043_v27 = vmul.f32 -1.442695, %v1345_v12  ;;  %v1226_v54 = vadd.f32 %v4443_v45, %v4168_v3  ;;  %v1231_v17 = vadd.f32 %v4445_v1, %v4498_v53 }
 0x318   : > { %3489 = vpow2.f32 %v3054_v35  ;;  %v3044_v43 = vmul.f32 -1.442695, %v1346_v2  ;;  %v1293_v46 = vpop.permute.xlu0 %1292 }
 0x319   : > { %3491 = vpow2.f32 %v3043_v27  ;;  %v1349_v61 = vadd.f32 %v1293_v46, %v1237_v5  ;;  %v1350_v38 = vadd.f32 %v1293_v46, %v1238_v44  ;;  %v953_v27 = vpop.f32.mrf.mxu1 }
 0x31a   : > { %3493 = vpow2.f32 %v3044_v43  ;;  %v1288_v24 = vpop.permute.xlu1 %1287 }
 0x31b   : > { %v3047_v18 = vmul.f32 -1.442695, %v1349_v61  ;;  %v3048_v63 = vmul.f32 -1.442695, %v1350_v38  ;;  %v1347_v6 = vadd.f32 %v1288_v24, %v1235_v20  ;;  %v1348_v11 = vadd.f32 %v1288_v24, %v1236_v57 }
 0x31c   : > { %v1263_v50 = vpop.permute.xlu0 %1262  ;;  %v1224_v57 = vadd.f32 %v4439_v33, %v4135_v39 }
 0x31d   : > { %3495 = vpow2.f32 %v3047_v18  ;;  %v3045_v48 = vmul.f32 -1.442695, %v1347_v6  ;;  %v3046_v31 = vmul.f32 -1.442695, %v1348_v11  ;;  %v1337_v56 = vadd.f32 %v1263_v50, %v1225_v14  ;;  %v4517_v11 = vpop.f32.mrf.mxu1 }
 0x31e   : > { %3497 = vpow2.f32 %v3048_v63  ;;  %v1338_v35 = vadd.f32 %v1263_v50, %v1226_v54  ;;  %v1278_v12 = vpop.permute.xlu1 %1277 }
 0x31f   : > { %3499 = vpow2.f32 %v3045_v48  ;;  %v3051_v2 = vmul.f32 -1.442695, %v1337_v56  ;;  %v1343_v5 = vadd.f32 %v1278_v12, %v1231_v17  ;;  %v1344_v45 = vadd.f32 %v1278_v12, %v1232_v47 }
 0x320   : > { %3501 = vpow2.f32 %v3046_v31  ;;  %v3052_v44 = vmul.f32 -1.442695, %v1338_v35  ;;  %v1258_v1 = vpop.permute.xlu0 %1257  ;;  %v4519_v35 = vpop.f32.mrf.mxu1 }
 0x321   : > { %3503 = vpow2.f32 %v3051_v2  ;;  %v3041_v20 = vmul.f32 -1.442695, %v1343_v5  ;;  %v3042_v43 = vmul.f32 -1.442695, %v1344_v45  ;;  %v1335_v14 = vadd.f32 %v1258_v1, %v1223_v0 }
 0x322   : > { %v3484_v46 = vpop.eup %3483  ;;  %3505 = vpow2.f32 %v3052_v44  ;;  %v1336_v63 = vadd.f32 %v1258_v1, %v1224_v57 }
 0x323   : > { %v3486_v61 = vpop.eup %3485  ;;  %v1461_v38 = vadd.f32 1.0, %v3484_v46  ;;  %3507 = vpow2.f32 %v3041_v20  ;;  %v3049_v50 = vmul.f32 -1.442695, %v1335_v14  ;;  %v1241_v20 = vadd.f32 %v4453_v21, %v4187_v30 }
 0x324   : > { %v3488_v24 = vpop.eup %3487  ;;  %v1462_v18 = vadd.f32 1.0, %v3486_v61  ;;  %3509 = vpow2.f32 %v3042_v43  ;;  %v3050_v31 = vmul.f32 -1.442695, %v1336_v63  ;;  %v1303_v56 = vpop.permute.xlu0 %1302  ;;  %v1242_v61 = vadd.f32 %v4455_v19, %v4192_v34 }
 0x325   : > { %v3490_v6 = vpop.eup %3489  ;;  %3511 = vrcp.f32 %v1461_v38  ;;  %v1459_v42 = vadd.f32 1.0, %v3488_v24  ;;  %v1323_v2 = vpop.permute.xlu1 %1322  ;;  %v1250_v21 = vadd.f32 %v953_v27, %v4219_v28 }
 0x326   : > { %v3492_v54 = vpop.eup %3491  ;;  %3513 = vrcp.f32 %v1462_v18  ;;  %v1460_v17 = vadd.f32 1.0, %v3490_v6  ;;  %v961_v43 = vpop.f32.mrf.mxu1  ;;  %v1249_v18 = vadd.f32 %v4511_v16, %v4216_v23  ;;  %v1353_v6 = vadd.f32 %v1303_v56, %v1241_v20 }
 0x327   : > { %v3494_v47 = vpop.eup %3493  ;;  %3515 = vrcp.f32 %v1459_v42  ;;  %v1393_v33 = vadd.f32 1.0, %v3492_v54  ;;  %v1362_v16 = vadd.f32 %v1323_v2, %v1250_v21  ;;  %v1253_v27 = vadd.f32 %v961_v43, %v4176_v10  ;;  %v5164_v21 = vld [vmem:[#allocation9_spill] sm:$0xff] }
 0x328   : > { %3517 = vrcp.f32 %v1460_v17  ;;  %v1394_v48 = vadd.f32 1.0, %v3494_v47  ;;  %v1313_v14 = vpop.permute.xlu0 %1312  ;;  %v1354_v17 = vadd.f32 %v1303_v56, %v1242_v61  ;;  %v3059_v56 = vmul.f32 -1.442695, %v1353_v6 }
 0x329   : > { %3519 = vrcp.f32 %v1393_v33  ;;  %v1333_v47 = vpop.permute.xlu1 %1332  ;;  %v1244_v6 = vadd.f32 %v4459_v52, %v4195_v41  ;;  %v5165_v52 = vld [vmem:[#allocation11_spill] sm:$0xff] }
 0x32a   : > { %v3496_v12 = vpop.eup %3495  ;;  %3521 = vrcp.f32 %v1394_v48  ;;  %v1361_v48 = vadd.f32 %v1323_v2, %v1249_v18  ;;  %v3060_v20 = vmul.f32 -1.442695, %v1354_v17 }
 0x32b   : > { %v3498_v5 = vpop.eup %3497  ;;  %v1397_v45 = vadd.f32 1.0, %v3496_v12  ;;  %3523 = vpow2.f32 %v3049_v50  ;;  %v963_v50 = vpop.f32.mrf.mxu1 }
 0x32c   : > { %v3500_v44 = vpop.eup %3499  ;;  %v1398_v1 = vadd.f32 1.0, %v3498_v5  ;;  %3525 = vpow2.f32 %v3050_v31 }
 0x32d   : > { %v3502_v0 = vpop.eup %3501  ;;  %3527 = vrcp.f32 %v1397_v45  ;;  %v1395_v46 = vadd.f32 1.0, %v3500_v44  ;;  %v1245_v45 = vadd.f32 %v4461_v22, %v4200_v51 }
 0x32e   : > { %v3504_v57 = vpop.eup %3503  ;;  %3529 = vrcp.f32 %v1398_v1  ;;  %v1396_v38 = vadd.f32 1.0, %v3502_v0  ;;  %v1246_v1 = vadd.f32 %v4470_v13, %v4207_v62  ;;  %v1254_v0 = vadd.f32 %v963_v50, %v4180_v15 }
 0x32f   : > { %v3506_v24 = vpop.eup %3505  ;;  %3531 = vrcp.f32 %v1395_v46  ;;  %v1457_v63 = vadd.f32 1.0, %v3504_v57  ;;  %v1308_v46 = vpop.permute.xlu0 %1307  ;;  %v1365_v57 = vadd.f32 %v1333_v47, %v1253_v27  ;;  %v1357_v61 = vadd.f32 %v1313_v14, %v1245_v45  ;;  %v5166_v45 = vld [vmem:[#allocation48_spill] sm:$0xff] }
 0x330   : > { %v3508_v42 = vpop.eup %3507  ;;  %3533 = vrcp.f32 %v1396_v38  ;;  %v1458_v54 = vadd.f32 1.0, %v3506_v24  ;;  %v1366_v43 = vadd.f32 %v1333_v47, %v1254_v0  ;;  %v1358_v38 = vadd.f32 %v1313_v14, %v1246_v1  ;;  %v1328_v24 = vpop.permute.xlu1 %1327  ;;  %v5168_v1 = vld [vmem:[#allocation49_spill] sm:$0xff] }
 0x331   : > { %v3510_v33 = vpop.eup %3509  ;;  %3535 = vrcp.f32 %v1457_v63  ;;  %v1391_v19 = vadd.f32 1.0, %v3508_v42  ;;  %v1243_v63 = vadd.f32 %v4457_v9, %v4189_v32  ;;  %v1251_v42 = vadd.f32 %v4517_v11, %v4170_v4 }
 0x332   : > { %v4528_v31 = vpop.eup %3511  ;;  %3537 = vrcp.f32 %v1458_v54  ;;  %v1392_v12 = vadd.f32 1.0, %v3510_v33  ;;  %v1252_v54 = vadd.f32 %v4519_v35, %v5164_v21  ;;  %v3063_v14 = vmul.f32 -1.442695, %v1357_v61  ;;  %v5167_v35 = vld [vmem:[#allocation10_spill] sm:$0xff] }
 0x333   : > { %v4530_v5 = vpop.eup %3513  ;;  %3539 = vrcp.f32 %v1391_v19  ;;  %v1355_v33 = vadd.f32 %v1308_v46, %v1243_v63  ;;  %v3064_v9 = vmul.f32 -1.442695, %v1358_v38  ;;  %v1239_v27 = vadd.f32 %v5166_v45, %v5165_v52  ;;  %v5169_v63 = vld [vmem:[#allocation12_spill] sm:$0xff] }
 0x334   : > { %v4535_v44 = vpop.eup %3515  ;;  %3541 = vrcp.f32 %v1392_v12  ;;  %v1298_v12 = vpop.permute.xlu0 %1297  ;;  %v1363_v11 = vadd.f32 %v1328_v24, %v1251_v42  ;;  %v1240_v0 = vadd.f32 %v5168_v1, %v5167_v35 }
 0x335   : > { %v4540_v2 = vpop.eup %3517  ;;  %3543 = vtanh.f32 %v1361_v48  ;;  %v1356_v48 = vadd.f32 %v1308_v46, %v1244_v6  ;;  %v3061_v46 = vmul.f32 -1.442695, %v1355_v33  ;;  %v1351_v38 = vadd.f32 %v1298_v12, %v1239_v27  ;;  %v5170_v6 = vld [vmem:[#allocation13_spill] sm:$0xff]  ;;  %v5171_v27 = vld [vmem:[#allocation22_spill] sm:$0xff] }
 0x336   : > { %v3520_v22 = vpop.eup %3519  ;;  %3545 = vtanh.f32 %v1362_v16 }
 0x337   : > { %v3522_v18 = vpop.eup %3521  ;;  %3547 = vpow2.f32 %v3059_v56  ;;  %v3062_v42 = vmul.f32 -1.442695, %v1356_v48  ;;  %v3057_v21 = vmul.f32 -1.442695, %v1351_v38 }
 0x338   : > { %v3524_v13 = vpop.eup %3523  ;;  %3549 = vpow2.f32 %v3060_v20  ;;  %v1364_v20 = vadd.f32 %v1328_v24, %v1252_v54 }
 0x339   : > { %v3526_v17 = vpop.eup %3525  ;;  %v1455_v47 = vadd.f32 1.0, %v3524_v13  ;;  %3551 = vtanh.f32 %v1365_v57  ;;  %v1318_v57 = vpop.permute.xlu1 %1317 }
 0x33a   : > { %v3528_v50 = vpop.eup %3527  ;;  %v1456_v19 = vadd.f32 1.0, %v3526_v17  ;;  %3553 = vtanh.f32 %v1366_v43  ;;  %v1247_v43 = vadd.f32 %v4483_v55, %v5169_v63  ;;  %v1248_v17 = vadd.f32 %v4495_v59, %v5170_v6 }
 0x33b   : > { %v3530_v16 = vpop.eup %3529  ;;  %3555 = vrcp.f32 %v1455_v47  ;;  %v1352_v47 = vadd.f32 %v1298_v12, %v1240_v0  ;;  %v1417_v63 = vmul.f32 %v3520_v22, %v5171_v27 }
 0x33c   : > { %v3532_v56 = vpop.eup %3531  ;;  %3557 = vrcp.f32 %v1456_v19  ;;  %v1359_v1 = vadd.f32 %v1318_v57, %v1247_v43  ;;  %v1360_v24 = vadd.f32 %v1318_v57, %v1248_v17  ;;  %v5174_v57 = vld [vmem:[#allocation18_spill] sm:$0xff] }
 0x33d   : > { %v3534_v61 = vpop.eup %3533  ;;  %3559 = vpow2.f32 %v3063_v14  ;;  %v3058_v14 = vmul.f32 -1.442695, %v1352_v47  ;;  %v1421_v43 = vmul.f32 %v3528_v50, %v5174_v57 }
 0x33e   : > { %v3536_v13 = vpop.eup %3535  ;;  %3561 = vpow2.f32 %v3064_v9  ;;  %v5172_v9 = vld [vmem:[#allocation23_spill] sm:$0xff] }
 0x33f   : > { %v3538_v45 = vpop.eup %3537  ;;  %3563 = vtanh.f32 %v1363_v11  ;;  %v1418_v48 = vmul.f32 %v3522_v18, %v5172_v9 }
 0x340   : > { %v3540_v19 = vpop.eup %3539  ;;  %3565 = vtanh.f32 %v1364_v20 }
 0x341   : > { %v3542_v54 = vpop.eup %3541  ;;  %3567 = vpow2.f32 %v3061_v46 }
 0x342   : > { %v3544_v55 = vpop.eup %3543  ;;  %3569 = vpow2.f32 %v3062_v42  ;;  %v5176_v42 = vld [vmem:[#allocation19_spill] sm:$0xff] }
 0x343   : > { %v3546_v33 = vpop.eup %3545  ;;  %v1481_v35 = vmul.f32 %v3544_v55, %v3536_v13  ;;  %3571 = vtanh.f32 %v1359_v1  ;;  %v1422_v22 = vmul.f32 %v3530_v16, %v5176_v42 }
 0x344   : > { %v3548_v59 = vpop.eup %3547  ;;  %v1482_v12 = vmul.f32 %v3546_v33, %v3538_v45  ;;  %3573 = vtanh.f32 %v1360_v24  ;;  %v5179_v24 = vld [vmem:[#allocation16_spill] sm:$0xff]  ;;  %v5180_v33 = vld [vmem:[#allocation17_spill] sm:$0xff] }
 0x345   : > { %v3550_v11 = vpop.eup %3549  ;;  %v4560_v0 = vadd.f32 %v1481_v35, %v1417_v63  ;;  %v1521_v20 = vadd.f32 1.0, %v3548_v59  ;;  %3575 = vpow2.f32 %v3057_v21  ;;  %v1419_v55 = vmul.f32 %v3532_v56, %v5179_v24 }
 0x346   : > { %v3552_v46 = vpop.eup %3551  ;;  %v4563_v38 = vadd.f32 %v1482_v12, %v1418_v48  ;;  %v1522_v17 = vadd.f32 1.0, %v3550_v11  ;;  %3577 = vpow2.f32 %v3058_v14 }
 0x347   : > { %5173 = vst [vmem:[#allocation11_spill] sm:$0xff] %v4560_v0  ;;  %v3554_v13 = vpop.eup %3553  ;;  %3579 = vrcp.f32 %v1521_v20  ;;  %v1485_v18 = vmul.f32 %v3552_v46, %v4528_v31 }
 0x348   : > { %5175 = vst [vmem:[#allocation48_spill] sm:$0xff] %v4563_v38  ;;  %v3556_v47 = vpop.eup %3555  ;;  %3581 = vrcp.f32 %v1522_v17  ;;  %v1486_v35 = vmul.f32 %v3554_v13, %v4530_v5  ;;  %v1420_v5 = vmul.f32 %v3534_v61, %v5180_v33  ;;  %v5183_v61 = vld [vmem:[#allocation21_spill] sm:$0xff] }
 0x349   : > { %v3558_v63 = vpop.eup %3557  ;;  %v4568_v45 = vadd.f32 %v1485_v18, %v1421_v43  ;;  %3583 = vtanh.f32 %v4560_v0  ;;  %v1415_v17 = vmul.f32 %v3540_v19, %v5183_v61 }
 0x34a   : > { %v3560_v21 = vpop.eup %3559  ;;  %v4571_v50 = vadd.f32 %v1486_v35, %v1422_v22  ;;  %3585 = vtanh.f32 %v4563_v38 }
 0x34b   : > { %5177 = vst [vmem:[#allocation49_spill] sm:$0xff] %v4568_v45  ;;  %v3562_v16 = vpop.eup %3561  ;;  %v1525_v1 = vadd.f32 1.0, %v3560_v21  ;;  %3587 = vtanh.f32 %v4568_v45 }
 0x34c   : > { %5178 = vst [vmem:[#allocation13_spill] sm:$0xff] %v4571_v50  ;;  %v3564_v31 = vpop.eup %3563  ;;  %v1526_v14 = vadd.f32 1.0, %v3562_v16  ;;  %3589 = vtanh.f32 %v4571_v50 }
 0x34d   : > { %v3566_v27 = vpop.eup %3565  ;;  %3591 = vrcp.f32 %v1525_v1  ;;  %v1483_v59 = vmul.f32 %v3564_v31, %v4535_v44  ;;  %v5184_v44 = vld [vmem:[#allocation20_spill] sm:$0xff] }
 0x34e   : > { %v3568_v9 = vpop.eup %3567  ;;  %3593 = vrcp.f32 %v1526_v14  ;;  %v1484_v48 = vmul.f32 %v3566_v27, %v4540_v2  ;;  %v1416_v13 = vmul.f32 %v3542_v54, %v5184_v44 }
 0x34f   : > { %v3570_v12 = vpop.eup %3569  ;;  %v4580_v11 = vadd.f32 %v1483_v59, %v1419_v55  ;;  %v1523_v56 = vadd.f32 1.0, %v3568_v9 }
 0x350   : > { %v3572_v20 = vpop.eup %3571  ;;  %v4582_v57 = vadd.f32 %v1484_v48, %v1420_v5  ;;  %v1524_v43 = vadd.f32 1.0, %v3570_v12 }
 0x351   : > { %5181 = vst [vmem:[#allocation22_spill] sm:$0xff] %v4580_v11  ;;  %v3574_v46 = vpop.eup %3573  ;;  %3595 = vrcp.f32 %v1523_v56  ;;  %v1479_v42 = vmul.f32 %v3572_v20, %v3556_v47 }
 0x352   : > { %5182 = vst [vmem:[#allocation23_spill] sm:$0xff] %v4582_v57  ;;  %v3576_v22 = vpop.eup %3575  ;;  %3597 = vrcp.f32 %v1524_v43  ;;  %v1480_v18 = vmul.f32 %v3574_v46, %v3558_v63 }
 0x353   : > { %v3578_v35 = vpop.eup %3577  ;;  %v4586_v2 = vadd.f32 %v1479_v42, %v1415_v17  ;;  %v1519_v21 = vadd.f32 1.0, %v3576_v22  ;;  %3599 = vtanh.f32 %v4580_v11 }
 0x354   : > { %v3580_v16 = vpop.eup %3579  ;;  %v4589_v1 = vadd.f32 %v1480_v18, %v1416_v13  ;;  %v1520_v24 = vadd.f32 1.0, %v3578_v35  ;;  %3601 = vtanh.f32 %v4582_v57 }
 0x355   : > { %5185 = vst [vmem:[#allocation18_spill] sm:$0xff] %v4586_v2  ;;  %v3582_v55 = vpop.eup %3581  ;;  %3603 = vrcp.f32 %v1519_v21 }
 0x356   : > { %5186 = vst [vmem:[#allocation19_spill] sm:$0xff] %v4589_v1  ;;  %v3584_v19 = vpop.eup %3583  ;;  %3605 = vrcp.f32 %v1520_v24 }
 0x357   : > { %v3586_v47 = vpop.eup %3585  ;;  %3607 = vtanh.f32 %v4586_v2  ;;  %v1553_v27 = vmul.f32 %v3584_v19, %v3580_v16 }
 0x358   : > { %v3588_v54 = vpop.eup %3587  ;;  %3609 = vtanh.f32 %v4589_v1  ;;  %v1554_v59 = vmul.f32 %v3586_v47, %v3582_v55  ;;  %v5187_v47 = vld [vmem:[#allocation24_spill] sm:$0xff] }
 0x359   : > { %v3590_v63 = vpop.eup %3589 }
 0x35a   : > { %v3592_v31 = vpop.eup %3591  ;;  %v1679_v20 = vadd.f32 %v1554_v59, %v1553_v27 }
 0x35b   : > { %v3594_v14 = vpop.eup %3593  ;;  %v1557_v33 = vmul.f32 %v3592_v31, %v3588_v54  ;;  %v5188_v54 = vmov 0   ;;  %v5190_v31 = vld [vmem:[#allocation26_spill] sm:$0xff] }
 0x35c   : > { %v1558_v5 = vmul.f32 %v3594_v14, %v3590_v63  ;;  %v5189_v63 = vld [vmem:[#allocation25_spill] sm:$0xff]  ;;  %v5191_v14 = vld [vmem:[#allocation28_spill] sm:$0xff] }
 0x35e   : > { %v3596_v9 = vpop.eup %3595  ;;  %v1685_v48 = vadd.f32 %v1558_v5, %v1557_v33 }
 0x35f   : > { %v3598_v12 = vpop.eup %3597 }
 0x360   : > { %v3600_v56 = vpop.eup %3599  ;;  %1686 = vadd.xlane.f32.xlu0 %v1685_v48 }
 0x361   : > { %v3602_v43 = vpop.eup %3601  ;;  %v1555_v46 = vmul.f32 %v3600_v56, %v3596_v9  ;;  %v5196_v9 = vld [vmem:[#allocation27_spill] sm:$0xff] }
 0x362   : > { %v3604_v61 = vpop.eup %3603  ;;  %v1556_v17 = vmul.f32 %v3602_v43, %v3598_v12 }
 0x363   : > { %v3606_v42 = vpop.eup %3605  ;;  %v1561_v22 = vpack.c.bf16 %v1557_v33, %v1555_v46  ;;  %v5192_v33 = vld [vmem:[#allocation29_spill] sm:$0xff] }
 0x364   : > { %v3608_v44 = vpop.eup %3607  ;;  %v1682_v13 = vadd.f32 %v1556_v17, %v1555_v46  ;;  %v1562_v18 = vpack.c.bf16 %v1558_v5, %v1556_v17  ;;  %1680 = vadd.xlane.f32.xlu0 %v1679_v20  ;;  %v5193_v5 = vld [vmem:[#allocation30_spill] sm:$0xff] }
 0x365   : > { %v3610_v35 = vpop.eup %3609  ;;  %v1551_v21 = vmul.f32 %v3608_v44, %v3604_v61  ;;  %v5199_v44 = vld [vmem:[#allocation35_spill] sm:$0xff] }
 0x366   : > { %1683 = vadd.xlane.f32.xlu1 %v1682_v13  ;;  %1575 = vmatprep.subr.bf16.mxu1 %v1562_v18  ;;  %v1552_v16 = vmul.f32 %v3610_v35, %v3606_v42  ;;  %v5197_v42 = vld [vmem:[#allocation33_spill] sm:$0xff]  ;;  %v5200_v13 = vld [vmem:[#allocation36_spill] sm:$0xff]  ;;  %v5202_v35 = vld [vmem:[#allocation38_spill] sm:$0xff] }
 0x367   : > { %1576 = vmatpush1.bf16.msra.mxu1 %v1561_v22  ;;  %v1559_v24 = vpack.c.bf16 %v1553_v27, %v1551_v21  ;;  %v5194_v27 = vld [vmem:[#allocation31_spill] sm:$0xff]  ;;  %v5198_v22 = vld [vmem:[#allocation34_spill] sm:$0xff]  ;;  %v5201_v18 = vld [vmem:[#allocation37_spill] sm:$0xff] }
 0x368   : > { %v1676_v55 = vadd.f32 %v1552_v16, %v1551_v21  ;;  %v1560_v19 = vpack.c.bf16 %v1554_v59, %v1552_v16  ;;  %v5195_v59 = vld [vmem:[#allocation32_spill] sm:$0xff]  ;;  %v5203_v21 = vld [vmem:[#allocation39_spill] sm:$0xff] }
 0x369   : > { %v5204_v16 = vld [vmem:[#allocation40_spill] sm:$0xff] }
 0x36a   : > { %1677 = vadd.xlane.f32.xlu0 %v1676_v55  ;;  %1577 = vmatprep.subr.bf16.mxu1 %v1560_v19  ;;  %v5206_v55 = vld [vmem:[#allocation42_spill] sm:$0xff]  ;;  %v5207_v19 = vld [vmem:[#allocation43_spill] sm:$0xff] }
 0x36b   : > { %1578 = vmatpush1.bf16.msra.mxu1 %v1559_v24  ;;  %v5205_v24 = vld [vmem:[#allocation41_spill] sm:$0xff] }
 0x36e   : > { %3065 = vmatmul.mubr.msk.bf16.vlgmr.msra.gmra.mxu1 %vm828_vm2, %v5187_v47  ;;  %v5208_v47 = vld [vmem:[#allocation44_spill] sm:$0xff] }
 0x36f   : > { %1605 = vmatprep.mubr.bf16.mxu1 %v5188_v54 }
 0x376   : > { %3066 = vmatmul.mubr.msk.bf16.gmra.mxu1 %vm828_vm2, %v5189_v63  ;;  %v5209_v63 = vld [vmem:[#allocation45_spill] sm:$0xff] }
 0x377   : > { %1615 = vmatprep.mubr.bf16.mxu1 %v5188_v54 }
 0x37e   : > { %3067 = vmatmul.mubr.msk.bf16.gmra.mxu1 %vm828_vm2, %v5190_v31  ;;  %v5210_v31 = vld [vmem:[#allocation46_spill] sm:$0xff] }
 0x37f   : > { %1625 = vmatprep.mubr.bf16.mxu1 %v5188_v54 }
 0x386   : > { %3068 = vmatmul.mubr.msk.bf16.gmra.mxu1 %vm828_vm2, %v5191_v14  ;;  %v5211_v14 = vld [vmem:[#allocation47_spill] sm:$0xff] }
 0x387   : > { %1635 = vmatprep.mubr.bf16.mxu1 %v5188_v54 }
 0x38e   : > { %3069 = vmatmul.mubr.msk.bf16.gmra.mxu1 %vm828_vm2, %v5192_v33 }
 0x38f   : > { %1645 = vmatprep.mubr.bf16.mxu1 %v5188_v54 }
 0x396   : > { %3070 = vmatmul.mubr.msk.bf16.gmra.mxu1 %vm828_vm2, %v5193_v5 }
 0x397   : > { %1655 = vmatprep.mubr.bf16.mxu1 %v5188_v54 }
 0x39e   : > { %3071 = vmatmul.mubr.msk.bf16.gmra.mxu1 %vm828_vm2, %v5194_v27 }
 0x39f   : > { %1665 = vmatprep.mubr.bf16.mxu1 %v5188_v54 }
 0x3a6   : > { %3072 = vmatmul.mubr.msk.bf16.gmra.mxu1 %vm828_vm2, %v5195_v59 }
 0x3a7   : > { %3302 = vmatprep.mubr.msk.f32.mxu1 %vm828_vm2, %v5196_v9 }
 0x3e9   : > { %v1687_v48 = vpop.xlane.xlu0 %1686 }
 0x3ea   : > { %v1691_v12 = vmul.f32 0.00390625, %v1687_v48 }
 0x3ec   : > { %3262 = vmatprep.subr.mxu0 %v1691_v12 }
 0x3ed   : > { %3263 = vmatpush3.msra.mxu0 %v1691_v12  ;;  %v1681_v56 = vpop.xlane.xlu0 %1680 }
 0x3ee   : > { %v1689_v46 = vmul.f32 0.00390625, %v1681_v56 }
 0x3ef   : > { %v1684_v20 = vpop.xlane.xlu1 %1683 }
 0x3f0   : > { %v1690_v43 = vmul.f32 0.00390625, %v1684_v20 }
 0x3f2   : > { %3264 = vmatprep.subr.mxu0 %v1690_v43 }
 0x3f3   : > { %3265 = vmatpush3.msra.mxu0 %v1690_v43  ;;  %v1678_v61 = vpop.xlane.xlu0 %1677 }
 0x3f4   : > { %3266 = vmatprep.subr.mxu0 %v1689_v46  ;;  %v1688_v17 = vmul.f32 0.00390625, %v1678_v61 }
 0x3f5   : > { %3267 = vmatpush3.msra.mxu0 %v1689_v46 }
 0x3f6   : > { %3268 = vmatprep.subr.mxu0 %v1688_v17 }
 0x3f7   : > { %3269 = vmatpush3.msra.mxu0 %v1688_v17 }
 0x3f8   : > { %3271 = vmatmul.mubr.msk.f32.vlgmr.msra.gmra.mxu0 %vm828_vm2, %v5197_v42 }
 0x3f9   : > { %3273 = vmatprep.mubr.msk.f32.mxu0 %vm828_vm2, %v5198_v22 }
 0x3fc   : > { %3274 = vmatmul.mubr.msk.f32.gmra.mxu0 %vm828_vm2, %v5199_v44 }
 0x3fd   : > { %3276 = vmatprep.mubr.msk.f32.mxu0 %vm828_vm2, %v5200_v13 }
 0x400   : > { %3277 = vmatmul.mubr.msk.f32.gmra.mxu0 %vm828_vm2, %v5201_v18 }
 0x401   : > { %3279 = vmatprep.mubr.msk.f32.mxu0 %vm828_vm2, %v5202_v35 }
 0x404   : > { %3280 = vmatmul.mubr.msk.f32.gmra.mxu0 %vm828_vm2, %v5203_v21 }
 0x405   : > { %3282 = vmatprep.mubr.msk.f32.mxu0 %vm828_vm2, %v5204_v16 }
 0x408   : > { %3283 = vmatmul.mubr.msk.f32.gmra.mxu0 %vm828_vm2, %v5205_v24 }
 0x409   : > { %3285 = vmatprep.mubr.msk.f32.mxu0 %vm828_vm2, %v5206_v55 }
 0x40c   : > { %3286 = vmatmul.mubr.msk.f32.gmra.mxu0 %vm828_vm2, %v5207_v19 }
 0x40d   : > { %3288 = vmatprep.mubr.msk.f32.mxu0 %vm828_vm2, %v5208_v47 }
 0x410   : > { %3289 = vmatmul.mubr.msk.f32.gmra.mxu0 %vm828_vm2, %v5209_v63 }
 0x411   : > { %3291 = vmatprep.mubr.msk.f32.mxu0 %vm828_vm2, %v5210_v31 }
 0x414   : > { %3292 = vmatmul.mubr.msk.f32.gmra.mxu0 %vm828_vm2, %v5211_v14 }
 0x415   : > { %2209 = vmatprep.mubr.bf16.mxu0 %v5188_v54 }
 0x42e   : > { %v4650_v13 = vpop.f32.mrf.mxu1 }
 0x430   : > { %v4652_v18 = vpop.f32.mrf.mxu1 }
 0x432   : > { %v1601_v35 = vpop.f32.mrf.mxu1 }
 0x434   : > { %v1603_v21 = vpop.f32.mrf.mxu1 }
 0x436   : > { %v1607_v16 = vpop.f32.mrf.mxu1 }
 0x437   : > { %v1841_v1 = vadd.f32 %v1607_v16, %v4133_v37 }
 0x438   : > { %v1609_v24 = vpop.f32.mrf.mxu1 }
 0x439   : > { %v1842_v2 = vadd.f32 %v1609_v24, %v4137_v40 }
 0x43a   : > { %v1611_v55 = vpop.f32.mrf.mxu1 }
 0x43c   : > { %v1613_v19 = vpop.f32.mrf.mxu1 }
 0x43e   : > { %v4654_v47 = vpop.f32.mrf.mxu1 }
 0x440   : > { %v4656_v63 = vpop.f32.mrf.mxu1 }
 0x442   : > { %v1621_v31 = vpop.f32.mrf.mxu1 }
 0x444   : > { %v1623_v14 = vpop.f32.mrf.mxu1 }
 0x4b8   : > { %v3272_v33 = vpop.f32.mrf.mxu0 }
 0x4ba   : > { %v1758_v5 = vpop.f32.mrf.mxu0 }
 0x4bc   : > { %v3275_v27 = vpop.f32.mrf.mxu0 }
 0x4bd   : > { %1886 = vperm.xlu1 %3369, %v3275_v27  }
 0x4be   : > { %v1768_v59 = vpop.f32.mrf.mxu0 }
 0x4c0   : > { %v3278_v9 = vpop.f32.mrf.mxu0 }
 0x4c1   : > { %1881 = vperm.xlu1 %3369, %v1768_v59  }
 0x4c2   : > { %v1778_v48 = vpop.f32.mrf.mxu0 }
 0x4c4   : > { %v3281_v12 = vpop.f32.mrf.mxu0 }
 0x4c5   : > { %1896 = vperm.xlu1 %3369, %v3278_v9   ;;  %1906 = vperm.xlu0 %3368, %v3281_v12  }
 0x4c6   : > { %v1788_v56 = vpop.f32.mrf.mxu0 }
 0x4c8   : > { %v3284_v20 = vpop.f32.mrf.mxu0 }
 0x4c9   : > { %1876 = vperm.xlu0 %3368, %v3272_v33   ;;  %1901 = vperm.xlu1 %3369, %v1788_v56   ;;  %v1627_v33 = vpop.f32.mrf.mxu1 }
 0x4ca   : > { %v1798_v43 = vpop.f32.mrf.mxu0 }
 0x4cc   : > { %v3287_v46 = vpop.f32.mrf.mxu0 }
 0x4cd   : > { %1871 = vperm.xlu0 %3368, %v1758_v5   ;;  %1891 = vperm.xlu1 %3369, %v1778_v48   ;;  %v1629_v5 = vpop.f32.mrf.mxu1 }
 0x4ce   : > { %v1808_v61 = vpop.f32.mrf.mxu0 }
 0x4cf   : > { %v1631_v27 = vpop.f32.mrf.mxu1 }
 0x4d0   : > { %v3290_v17 = vpop.f32.mrf.mxu0 }
 0x4d1   : > { %1916 = vperm.xlu0 %3368, %v3284_v20   ;;  %1936 = vperm.xlu1 %3369, %v3290_v17   ;;  %v1633_v59 = vpop.f32.mrf.mxu1 }
 0x4d2   : > { %v1818_v42 = vpop.f32.mrf.mxu0  ;;  %v1852_v24 = vadd.f32 %v1633_v59, %v4480_v60  ;;  %v1850_v59 = vadd.f32 %v1629_v5, %v4489_v26 }
 0x4d3   : > { %v4658_v9 = vpop.f32.mrf.mxu1 }
 0x4d4   : > { %v3293_v22 = vpop.f32.mrf.mxu0 }
 0x4d5   : > { %1926 = vperm.xlu0 %3368, %v3287_v46   ;;  %1946 = vperm.xlu1 %3369, %v3293_v22   ;;  %v4660_v48 = vpop.f32.mrf.mxu1 }
 0x4d6   : > { %v1828_v44 = vpop.f32.mrf.mxu0 }
 0x4d7   : > { %v4662_v12 = vpop.f32.mrf.mxu1 }
 0x4d9   : > { %1921 = vperm.xlu0 %3368, %v1808_v61   ;;  %1941 = vperm.xlu1 %3369, %v1828_v44   ;;  %v4664_v56 = vpop.f32.mrf.mxu1  ;;  %v5213_v61 = vld [vmem:[#allocation8_spill] sm:$0xff] }
 0x4da   : > { %v1844_v17 = vadd.f32 %v1613_v19, %v5213_v61  ;;  %v1848_v19 = vadd.f32 %v1623_v14, %v4473_v29 }
 0x4db   : > { %v4666_v20 = vpop.f32.mrf.mxu1 }
 0x4dd   : > { %1911 = vperm.xlu0 %3368, %v1798_v43   ;;  %1931 = vperm.xlu1 %3369, %v1818_v42   ;;  %v5212_v43 = vld [vmem:[#allocation7_spill] sm:$0xff]  ;;  %v4670_v42 = vpop.f32.mrf.mxu1 }
 0x4de   : > { %v1843_v46 = vadd.f32 %v1611_v55, %v5212_v43  ;;  %v1847_v55 = vadd.f32 %v1621_v31, %v4466_v49  ;;  %v1849_v31 = vadd.f32 %v1627_v33, %v4486_v25  ;;  %v1838_v33 = vadd.f32 %v4652_v18, %v4135_v39 }
 0x4df   : > { %v4674_v57 = vpop.f32.mrf.mxu1  ;;  %v1845_v18 = vadd.f32 %v4654_v47, %v4498_v53 }
 0x538   : > { %v1887_v22 = vpop.permute.xlu1 %1886 }
 0x539   : > { %v1955_v44 = vadd.f32 %v1887_v22, %v1843_v46  ;;  %v1956_v54 = vadd.f32 %v1887_v22, %v1844_v17  ;;  %v1851_v46 = vadd.f32 %v1631_v27, %v4477_v7  ;;  %v4679_v17 = vpop.f32.mrf.mxu1 }
 0x53b   : > { %v3103_v11 = vmul.f32 -1.442695, %v1955_v44  ;;  %v3104_v50 = vmul.f32 -1.442695, %v1956_v54  ;;  %v4685_v14 = vpop.f32.mrf.mxu1 }
 0x53c   : > { %v1882_v45 = vpop.permute.xlu1 %1881 }
 0x53d   : > { %3611 = vpow2.f32 %v3103_v11  ;;  %v1953_v38 = vadd.f32 %v1882_v45, %v1841_v1  ;;  %v1954_v0 = vadd.f32 %v1882_v45, %v1842_v2  ;;  %v1839_v45 = vadd.f32 %v1601_v35, %v4159_v58 }
 0x53e   : > { %3613 = vpow2.f32 %v3104_v50  ;;  %v1840_v50 = vadd.f32 %v1603_v21, %v4168_v3  ;;  %v1837_v21 = vadd.f32 %v4650_v13, %v4131_v36 }
 0x53f   : > { %v3101_v16 = vmul.f32 -1.442695, %v1953_v38  ;;  %v3102_v22 = vmul.f32 -1.442695, %v1954_v0 }
 0x540   : > { %v1897_v40 = vpop.permute.xlu1 %1896  ;;  %v1907_v44 = vpop.permute.xlu0 %1906 }
 0x541   : > { %3615 = vpow2.f32 %v3101_v16  ;;  %v1959_v54 = vadd.f32 %v1897_v40, %v1847_v55  ;;  %v1960_v11 = vadd.f32 %v1897_v40, %v1848_v19  ;;  %v1963_v1 = vadd.f32 %v1907_v44, %v1851_v46 }
 0x542   : > { %3617 = vpow2.f32 %v3102_v22  ;;  %v1964_v2 = vadd.f32 %v1907_v44, %v1852_v24  ;;  %v4692_v22 = vpop.f32.mrf.mxu1 }
 0x543   : > { %v3091_v38 = vmul.f32 -1.442695, %v1959_v54  ;;  %v3092_v0 = vmul.f32 -1.442695, %v1960_v11  ;;  %v3095_v27 = vmul.f32 -1.442695, %v1963_v1 }
 0x544   : > { %v3096_v29 = vmul.f32 -1.442695, %v1964_v2  ;;  %v1877_v16 = vpop.permute.xlu0 %1876  ;;  %v1902_v55 = vpop.permute.xlu1 %1901 }
 0x545   : > { %3619 = vpow2.f32 %v3091_v38  ;;  %v1951_v40 = vadd.f32 %v1877_v16, %v1839_v45  ;;  %v1952_v19 = vadd.f32 %v1877_v16, %v1840_v50  ;;  %v1961_v35 = vadd.f32 %v1902_v55, %v1849_v31  ;;  %v1661_v31 = vpop.f32.mrf.mxu1 }
 0x546   : > { %3621 = vpow2.f32 %v3092_v0  ;;  %v1962_v46 = vadd.f32 %v1902_v55, %v1850_v59  ;;  %v1846_v0 = vadd.f32 %v4656_v63, %v4501_v8 }
 0x547   : > { %3623 = vpow2.f32 %v3095_v27  ;;  %v3099_v24 = vmul.f32 -1.442695, %v1951_v40  ;;  %v3100_v5 = vmul.f32 -1.442695, %v1952_v19  ;;  %v3093_v44 = vmul.f32 -1.442695, %v1961_v35  ;;  %v1663_v35 = vpop.f32.mrf.mxu1 }
 0x548   : > { %3625 = vpow2.f32 %v3096_v29  ;;  %v3094_v54 = vmul.f32 -1.442695, %v1962_v46  ;;  %v1872_v11 = vpop.permute.xlu0 %1871  ;;  %v1892_v13 = vpop.permute.xlu1 %1891 }
 0x549   : > { %3627 = vpow2.f32 %v3099_v24  ;;  %v1949_v1 = vadd.f32 %v1872_v11, %v1837_v21  ;;  %v1950_v45 = vadd.f32 %v1872_v11, %v1838_v33  ;;  %v1957_v59 = vadd.f32 %v1892_v13, %v1845_v18 }
 0x54a   : > { %v3612_v50 = vpop.eup %3611  ;;  %3629 = vpow2.f32 %v3100_v5  ;;  %v1958_v40 = vadd.f32 %v1892_v13, %v1846_v0  ;;  %v1856_v18 = vadd.f32 %v4664_v56, %v4192_v34  ;;  %v1859_v56 = vadd.f32 %v4674_v57, %v4200_v51 }
 0x54b   : > { %v3614_v2 = vpop.eup %3613  ;;  %3631 = vpow2.f32 %v3093_v44  ;;  %v3097_v38 = vmul.f32 -1.442695, %v1949_v1  ;;  %v3098_v29 = vmul.f32 -1.442695, %v1950_v45  ;;  %v2075_v27 = vadd.f32 1.0, %v3612_v50  ;;  %v4698_v44 = vpop.f32.mrf.mxu1 }
 0x54c   : > { %3633 = vpow2.f32 %v3094_v54  ;;  %v2076_v55 = vadd.f32 1.0, %v3614_v2  ;;  %v3089_v47 = vmul.f32 -1.442695, %v1957_v59  ;;  %v3090_v24 = vmul.f32 -1.442695, %v1958_v40  ;;  %v1917_v5 = vpop.permute.xlu0 %1916 }
 0x54d   : > { %3635 = vpow2.f32 %v3097_v38  ;;  %v1855_v50 = vadd.f32 %v4662_v12, %v4187_v30  ;;  %v1968_v40 = vadd.f32 %v1917_v5, %v1856_v18 }
 0x54e   : > { %v3616_v16 = vpop.eup %3615  ;;  %3637 = vpow2.f32 %v3098_v29  ;;  %v4704_v29 = vpop.f32.mrf.mxu1 }
 0x54f   : > { %v3618_v19 = vpop.eup %3617  ;;  %v2073_v21 = vadd.f32 1.0, %v3616_v16  ;;  %3639 = vrcp.f32 %v2075_v27  ;;  %v1967_v59 = vadd.f32 %v1917_v5, %v1855_v50  ;;  %v1864_v5 = vadd.f32 %v1663_v35, %v4219_v28 }
 0x550   : > { %v2074_v33 = vadd.f32 1.0, %v3618_v19  ;;  %3641 = vrcp.f32 %v2076_v55  ;;  %v1937_v19 = vpop.permute.xlu1 %1936  ;;  %v1927_v12 = vpop.permute.xlu0 %1926 }
 0x551   : > { %3643 = vrcp.f32 %v2073_v21  ;;  %v1976_v57 = vadd.f32 %v1937_v19, %v1864_v5 }
 0x552   : > { %v3620_v46 = vpop.eup %3619  ;;  %3645 = vrcp.f32 %v2074_v33 }
 0x553   : > { %v3622_v63 = vpop.eup %3621  ;;  %v2007_v54 = vadd.f32 1.0, %v3620_v46  ;;  %3647 = vpow2.f32 %v3089_v47  ;;  %v1863_v46 = vadd.f32 %v1661_v31, %v4216_v23  ;;  %v5216_v23 = vld [vmem:[#allocation12_spill] sm:$0xff] }
 0x554   : > { %v3624_v11 = vpop.eup %3623  ;;  %v2008_v1 = vadd.f32 1.0, %v3622_v63  ;;  %3649 = vpow2.f32 %v3090_v24  ;;  %v1671_v24 = vpop.f32.mrf.mxu1  ;;  %v3107_v63 = vmul.f32 -1.442695, %v1967_v59 }
 0x555   : > { %v3626_v45 = vpop.eup %3625  ;;  %v2011_v13 = vadd.f32 1.0, %v3624_v11  ;;  %3651 = vrcp.f32 %v2007_v54  ;;  %v1860_v11 = vadd.f32 %v4679_v17, %v4207_v62  ;;  %v1975_v50 = vadd.f32 %v1937_v19, %v1863_v46  ;;  %v1947_v18 = vpop.permute.xlu1 %1946 }
 0x556   : > { %v3628_v2 = vpop.eup %3627  ;;  %v2012_v38 = vadd.f32 1.0, %v3626_v45  ;;  %3653 = vrcp.f32 %v2008_v1  ;;  %v3108_v1 = vmul.f32 -1.442695, %v1968_v40  ;;  %v1857_v17 = vadd.f32 %v4666_v20, %v4189_v32 }
 0x557   : > { %v3630_v0 = vpop.eup %3629  ;;  %v2071_v27 = vadd.f32 1.0, %v3628_v2  ;;  %3655 = vrcp.f32 %v2011_v13  ;;  %v1971_v13 = vadd.f32 %v1927_v12, %v1859_v56  ;;  %v1972_v31 = vadd.f32 %v1927_v12, %v1860_v11 }
 0x558   : > { %v3632_v16 = vpop.eup %3631  ;;  %v2072_v55 = vadd.f32 1.0, %v3630_v0  ;;  %3657 = vrcp.f32 %v2012_v38  ;;  %v1922_v38 = vpop.permute.xlu0 %1921  ;;  %v1867_v19 = vadd.f32 %v1671_v24, %v4176_v10  ;;  %v1853_v24 = vadd.f32 %v4658_v9, %v5165_v52 }
 0x559   : > { %v3634_v21 = vpop.eup %3633  ;;  %v2009_v33 = vadd.f32 1.0, %v3632_v16  ;;  %3659 = vrcp.f32 %v2071_v27  ;;  %v1673_v27 = vpop.f32.mrf.mxu1  ;;  %v1858_v16 = vadd.f32 %v4670_v42, %v4195_v41  ;;  %v3111_v12 = vmul.f32 -1.442695, %v1971_v13 }
 0x55a   : > { %v2010_v47 = vadd.f32 1.0, %v3634_v21  ;;  %v3636_v54 = vpop.eup %3635  ;;  %3661 = vrcp.f32 %v2072_v55  ;;  %v1969_v21 = vadd.f32 %v1922_v38, %v1857_v17  ;;  %v1868_v20 = vadd.f32 %v1673_v27, %v4180_v15  ;;  %v1942_v11 = vpop.permute.xlu1 %1941 }
 0x55b   : > { %v3638_v45 = vpop.eup %3637  ;;  %3663 = vrcp.f32 %v2009_v33  ;;  %v2069_v35 = vadd.f32 1.0, %v3636_v54  ;;  %v1970_v56 = vadd.f32 %v1922_v38, %v1858_v16  ;;  %v5215_v38 = vld [vmem:[#allocation9_spill] sm:$0xff] }
 0x55c   : > { %v4712_v2 = vpop.eup %3639  ;;  %3665 = vrcp.f32 %v2010_v47  ;;  %v2070_v55 = vadd.f32 1.0, %v3638_v45  ;;  %v3112_v47 = vmul.f32 -1.442695, %v1972_v31  ;;  %v1980_v42 = vadd.f32 %v1947_v18, %v1868_v20  ;;  %v1912_v5 = vpop.permute.xlu0 %1911 }
 0x55d   : > { %v4714_v0 = vpop.eup %3641  ;;  %3667 = vpow2.f32 %v3107_v63  ;;  %v1979_v63 = vadd.f32 %v1947_v18, %v1867_v19  ;;  %v1865_v45 = vadd.f32 %v4698_v44, %v4170_v4  ;;  %v1866_v17 = vadd.f32 %v4704_v29, %v5215_v38 }
 0x55e   : > { %v4718_v59 = vpop.eup %3643  ;;  %3669 = vpow2.f32 %v3108_v1  ;;  %v3110_v18 = vmul.f32 -1.442695, %v1970_v56  ;;  %v1965_v16 = vadd.f32 %v1912_v5, %v1853_v24  ;;  %v1861_v29 = vadd.f32 %v4685_v14, %v5216_v23 }
 0x55f   : > { %v4722_v40 = vpop.eup %3645  ;;  %3671 = vtanh.f32 %v1975_v50  ;;  %v3109_v50 = vmul.f32 -1.442695, %v1969_v21  ;;  %v1978_v9 = vadd.f32 %v1942_v11, %v1866_v17 }
 0x560   : > { %v3648_v33 = vpop.eup %3647  ;;  %3673 = vtanh.f32 %v1976_v57  ;;  %v5214_v57 = vld [vmem:[#allocation10_spill] sm:$0xff] }
 0x561   : > { %v3650_v46 = vpop.eup %3649  ;;  %3675 = vrcp.f32 %v2069_v35  ;;  %v1854_v31 = vadd.f32 %v4660_v48, %v5214_v57  ;;  %v1977_v35 = vadd.f32 %v1942_v11, %v1865_v45  ;;  %v1932_v48 = vpop.permute.xlu1 %1931 }
 0x562   : > { %v3652_v54 = vpop.eup %3651  ;;  %3677 = vrcp.f32 %v2070_v55  ;;  %v2006_v20 = vadd.f32 1.0, %v3650_v46 }
 0x563   : > { %v3654_v1 = vpop.eup %3653  ;;  %3679 = vpow2.f32 %v3111_v12  ;;  %v1966_v19 = vadd.f32 %v1912_v5, %v1854_v31  ;;  %v2005_v12 = vadd.f32 1.0, %v3648_v33  ;;  %v1973_v33 = vadd.f32 %v1932_v48, %v1861_v29 }
 0x564   : > { %v3656_v13 = vpop.eup %3655  ;;  %3681 = vpow2.f32 %v3112_v47  ;;  %v3105_v47 = vmul.f32 -1.442695, %v1965_v16 }
 0x565   : > { %v3658_v27 = vpop.eup %3657  ;;  %3683 = vtanh.f32 %v1979_v63  ;;  %v1862_v63 = vadd.f32 %v4692_v22, %v5170_v6 }
 0x566   : > { %v3660_v55 = vpop.eup %3659  ;;  %3685 = vtanh.f32 %v1980_v42  ;;  %v3106_v42 = vmul.f32 -1.442695, %v1966_v19 }
 0x567   : > { %v3662_v44 = vpop.eup %3661  ;;  %3687 = vpow2.f32 %v3109_v50  ;;  %v1974_v46 = vadd.f32 %v1932_v48, %v1862_v63  ;;  %v5217_v50 = vld [vmem:[#allocation11_spill] sm:$0xff] }
 0x568   : > { %v3664_v21 = vpop.eup %3663  ;;  %3689 = vpow2.f32 %v3110_v18  ;;  %v2031_v31 = vmul.f32 %v3652_v54, %v5217_v50  ;;  %v5221_v54 = vld [vmem:[#allocation49_spill] sm:$0xff] }
 0x569   : > { %v3666_v28 = vpop.eup %3665  ;;  %3691 = vtanh.f32 %v1977_v35  ;;  %v5218_v35 = vld [vmem:[#allocation48_spill] sm:$0xff] }
 0x56a   : > { %v3668_v56 = vpop.eup %3667  ;;  %3693 = vtanh.f32 %v1978_v9  ;;  %v2032_v16 = vmul.f32 %v3654_v1, %v5218_v35 }
 0x56b   : > { %v3670_v11 = vpop.eup %3669  ;;  %3695 = vrcp.f32 %v2005_v12  ;;  %v2135_v45 = vadd.f32 1.0, %v3668_v56  ;;  %v5222_v56 = vld [vmem:[#allocation13_spill] sm:$0xff] }
 0x56c   : > { %v3672_v5 = vpop.eup %3671  ;;  %3697 = vrcp.f32 %v2006_v20  ;;  %v2136_v18 = vadd.f32 1.0, %v3670_v11  ;;  %v2036_v1 = vmul.f32 %v3658_v27, %v5222_v56 }
 0x56d   : > { %v3674_v24 = vpop.eup %3673  ;;  %v2095_v17 = vmul.f32 %v3672_v5, %v3660_v55  ;;  %3699 = vpow2.f32 %v3105_v47  ;;  %v2035_v55 = vmul.f32 %v3656_v13, %v5221_v54  ;;  %v5224_v5 = vld [vmem:[#allocation22_spill] sm:$0xff] }
 0x56e   : > { %v3676_v14 = vpop.eup %3675  ;;  %v2096_v23 = vmul.f32 %v3674_v24, %v3662_v44  ;;  %3701 = vpow2.f32 %v3106_v42 }
 0x56f   : > { %v3678_v22 = vpop.eup %3677  ;;  %v4740_v9 = vadd.f32 %v2095_v17, %v2031_v31  ;;  %3703 = vtanh.f32 %v1973_v33 }
 0x570   : > { %v3680_v19 = vpop.eup %3679  ;;  %v4742_v12 = vadd.f32 %v2096_v23, %v2032_v16  ;;  %3705 = vtanh.f32 %v1974_v46  ;;  %v2033_v46 = vmul.f32 %v3664_v21, %v5224_v5 }
 0x571   : > { %5219 = vst [vmem:[#allocation16_spill] sm:$0xff] %v4740_v9  ;;  %v3682_v20 = vpop.eup %3681  ;;  %3707 = vrcp.f32 %v2135_v45  ;;  %v2139_v48 = vadd.f32 1.0, %v3680_v19 }
 0x572   : > { %5220 = vst [vmem:[#allocation17_spill] sm:$0xff] %v4742_v12  ;;  %v3684_v29 = vpop.eup %3683  ;;  %3709 = vrcp.f32 %v2136_v18  ;;  %v2140_v47 = vadd.f32 1.0, %v3682_v20 }
 0x573   : > { %v3686_v44 = vpop.eup %3685  ;;  %v2099_v63 = vmul.f32 %v3684_v29, %v4712_v2  ;;  %3711 = vtanh.f32 %v4740_v9  ;;  %v5226_v2 = vld [vmem:[#allocation23_spill] sm:$0xff] }
 0x574   : > { %v3688_v42 = vpop.eup %3687  ;;  %v2100_v23 = vmul.f32 %v3686_v44, %v4714_v0  ;;  %3713 = vtanh.f32 %v4742_v12  ;;  %v2034_v50 = vmul.f32 %v3666_v28, %v5226_v2  ;;  %v5228_v29 = vld [vmem:[#allocation19_spill] sm:$0xff] }
 0x575   : > { %v3690_v11 = vpop.eup %3689  ;;  %3715 = vrcp.f32 %v2139_v48  ;;  %v4750_v33 = vadd.f32 %v2099_v63, %v2035_v55  ;;  %v2137_v13 = vadd.f32 1.0, %v3688_v42  ;;  %v5227_v48 = vld [vmem:[#allocation18_spill] sm:$0xff] }
 0x576   : > { %v3692_v24 = vpop.eup %3691  ;;  %3717 = vrcp.f32 %v2140_v47  ;;  %v4753_v27 = vadd.f32 %v2100_v23, %v2036_v1  ;;  %v2138_v45 = vadd.f32 1.0, %v3690_v11 }
 0x577   : > { %5223 = vst [vmem:[#allocation21_spill] sm:$0xff] %v4750_v33  ;;  %v3694_v31 = vpop.eup %3693  ;;  %3719 = vrcp.f32 %v2137_v13  ;;  %v2097_v0 = vmul.f32 %v3692_v24, %v4718_v59 }
 0x578   : > { %5225 = vst [vmem:[#allocation20_spill] sm:$0xff] %v4753_v27  ;;  %v3696_v17 = vpop.eup %3695  ;;  %3721 = vrcp.f32 %v2138_v45  ;;  %v2098_v18 = vmul.f32 %v3694_v31, %v4722_v40 }
 0x579   : > { %v3698_v35 = vpop.eup %3697  ;;  %v4758_v16 = vadd.f32 %v2097_v0, %v2033_v46  ;;  %3723 = vtanh.f32 %v4750_v33  ;;  %v2029_v54 = vmul.f32 %v3696_v17, %v5227_v48 }
 0x57a   : > { %v3700_v21 = vpop.eup %3699  ;;  %v4761_v19 = vadd.f32 %v2098_v18, %v2034_v50  ;;  %3725 = vtanh.f32 %v4753_v27  ;;  %v2030_v40 = vmul.f32 %v3698_v35, %v5228_v29 }
 0x57b   : > { %v3702_v20 = vpop.eup %3701  ;;  %v2133_v28 = vadd.f32 1.0, %v3700_v21  ;;  %3727 = vtanh.f32 %v4758_v16 }
 0x57c   : > { %v3704_v59 = vpop.eup %3703  ;;  %v2134_v55 = vadd.f32 1.0, %v3702_v20  ;;  %3729 = vtanh.f32 %v4761_v19 }
 0x57d   : > { %v3706_v47 = vpop.eup %3705  ;;  %v2093_v56 = vmul.f32 %v3704_v59, %v3676_v14  ;;  %3731 = vrcp.f32 %v2133_v28 }
 0x57e   : > { %v3708_v1 = vpop.eup %3707  ;;  %v2094_v44 = vmul.f32 %v3706_v47, %v3678_v22  ;;  %3733 = vrcp.f32 %v2134_v55 }
 0x57f   : > { %v3710_v63 = vpop.eup %3709  ;;  %v4768_v42 = vadd.f32 %v2093_v56, %v2029_v54 }
 0x580   : > { %v3712_v23 = vpop.eup %3711  ;;  %v4770_v11 = vadd.f32 %v2094_v44, %v2030_v40 }
 0x581   : > { %5229 = vst [vmem:[#allocation24_spill] sm:$0xff] %v4768_v42  ;;  %v3714_v13 = vpop.eup %3713  ;;  %3735 = vtanh.f32 %v4768_v42  ;;  %v2167_v0 = vmul.f32 %v3712_v23, %v3708_v1 }
 0x582   : > { %5230 = vst [vmem:[#allocation25_spill] sm:$0xff] %v4770_v11  ;;  %v3716_v5 = vpop.eup %3715  ;;  %3737 = vtanh.f32 %v4770_v11  ;;  %v2168_v17 = vmul.f32 %v3714_v13, %v3710_v63  ;;  %v3867_v13 = vld [vmem:[%s5043_s3] sm:$0xff]  }
 0x583   : > { %v3718_v46 = vpop.eup %3717 }
 0x584   : > { %v3720_v24 = vpop.eup %3719  ;;  %v2293_v59 = vadd.f32 %v2168_v17, %v2167_v0 }
 0x585   : > { %v3722_v45 = vpop.eup %3721 }
 0x586   : > { %v3724_v14 = vpop.eup %3723 }
 0x587   : > { %v3726_v2 = vpop.eup %3725  ;;  %v2171_v22 = vmul.f32 %v3724_v14, %v3716_v5  ;;  %v5231_v5 = vmov 0   ;;  %v3871_v14 = vld [vmem:[%s5043_s3 + $0x20] sm:$0xff]  }
 0x588   : > { %v3728_v50 = vpop.eup %3727  ;;  %v2172_v31 = vmul.f32 %v3726_v2, %v3718_v46  ;;  %v3868_v46 = vld [vmem:[%s5043_s3 + $0x8] sm:$0xff]  }
 0x589   : > { %v3730_v18 = vpop.eup %3729  ;;  %v2169_v35 = vmul.f32 %v3728_v50, %v3720_v24  ;;  %v3869_v24 = vld [vmem:[%s5043_s3 + $0x10] sm:$0xff]   ;;  %v3872_v2 = vld [vmem:[%s5043_s3 + $0x28] sm:$0xff]   ;;  %v3874_v50 = vld [vmem:[%s5043_s3 + $0x38] sm:$0xff]  }
 0x58a   : > { %v2299_v21 = vadd.f32 %v2172_v31, %v2171_v22  ;;  %v2170_v20 = vmul.f32 %v3730_v18, %v3722_v45  ;;  %v3732_v48 = vpop.eup %3731  ;;  %v3870_v45 = vld [vmem:[%s5043_s3 + $0x18] sm:$0xff]  }
 0x58b   : > { %v2175_v28 = vpack.c.bf16 %v2171_v22, %v2169_v35  ;;  %v3734_v29 = vpop.eup %3733  ;;  %v3873_v22 = vld [vmem:[%s5043_s3 + $0x30] sm:$0xff]  }
 0x58c   : > { %2300 = vadd.xlane.f32.xlu0 %v2299_v21  ;;  %v2296_v54 = vadd.f32 %v2170_v20, %v2169_v35  ;;  %v2176_v55 = vpack.c.bf16 %v2172_v31, %v2170_v20 }
 0x58e   : > { %v3736_v40 = vpop.eup %3735  ;;  %2297 = vadd.xlane.f32.xlu1 %v2296_v54  ;;  %2189 = vmatprep.subr.bf16.mxu0 %v2176_v55  ;;  %v3876_v54 = vld [vmem:[%s5044_s4 + $0x10] sm:$0xff]  ;;  %v3878_v55 = vld [vmem:[%s5044_s4 + $0x20] sm:$0xff] }
 0x58f   : > { %v3738_v47 = vpop.eup %3737  ;;  %2190 = vmatpush1.bf16.msra.mxu0 %v2175_v28  ;;  %v2165_v56 = vmul.f32 %v3736_v40, %v3732_v48  ;;  %v3875_v48 = vld [vmem:[%s5044_s4 + $0x8] sm:$0xff]  ;;  %v3880_v40 = vld [vmem:[%s5044_s4 + $0x30] sm:$0xff] }
 0x590   : > { %2294 = vadd.xlane.f32.xlu0 %v2293_v59  ;;  %v2166_v1 = vmul.f32 %v3738_v47, %v3734_v29  ;;  %v3877_v59 = vld [vmem:[%s5044_s4 + $0x18] sm:$0xff]  ;;  %v3879_v29 = vld [vmem:[%s5044_s4 + $0x28] sm:$0xff] }
 0x591   : > { %v2173_v44 = vpack.c.bf16 %v2167_v0, %v2165_v56  ;;  %v3881_v47 = vld [vmem:[%s5044_s4 + $0x38] sm:$0xff] }
 0x592   : > { %v2290_v63 = vadd.f32 %v2166_v1, %v2165_v56  ;;  %v2174_v23 = vpack.c.bf16 %v2168_v17, %v2166_v1  ;;  %v3882_v56 = vld [vmem:[%s5044_s4 + $0x40] sm:$0xff]  ;;  %v3883_v1 = vld [vmem:[%s5044_s4 + $0x48] sm:$0xff] }
 0x594   : > { %2291 = vadd.xlane.f32.xlu0 %v2290_v63  ;;  %2191 = vmatprep.subr.bf16.mxu0 %v2174_v23  ;;  %v3885_v63 = vld [vmem:[%s5044_s4 + $0x58] sm:$0xff]  ;;  %v3886_v23 = vld [vmem:[%s5044_s4 + $0x60] sm:$0xff] }
 0x595   : > { %2192 = vmatpush1.bf16.msra.mxu0 %v2173_v44  ;;  %v3884_v44 = vld [vmem:[%s5044_s4 + $0x50] sm:$0xff] }
 0x598   : > { %3113 = vmatmul.mubr.msk.bf16.vlgmr.msra.gmra.mxu0 %vm828_vm2, %v3867_v13  ;;  %v3887_v13 = vld [vmem:[%s5044_s4 + $0x68] sm:$0xff] }
 0x599   : > { %2219 = vmatprep.mubr.bf16.mxu0 %v5231_v5 }
 0x5a0   : > { %3114 = vmatmul.mubr.msk.bf16.gmra.mxu0 %vm828_vm2, %v3868_v46  ;;  %v3888_v46 = vld [vmem:[%s5044_s4 + $0x70] sm:$0xff] }
 0x5a1   : > { %2229 = vmatprep.mubr.bf16.mxu0 %v5231_v5 }
 0x5a8   : > { %3115 = vmatmul.mubr.msk.bf16.gmra.mxu0 %vm828_vm2, %v3869_v24  ;;  %v3889_v24 = vld [vmem:[%s5044_s4 + $0x78] sm:$0xff] }
 0x5a9   : > { %2239 = vmatprep.mubr.bf16.mxu0 %v5231_v5 }
 0x5b0   : > { %3116 = vmatmul.mubr.msk.bf16.gmra.mxu0 %vm828_vm2, %v3870_v45 }
 0x5b1   : > { %2249 = vmatprep.mubr.bf16.mxu0 %v5231_v5 }
 0x5b8   : > { %3117 = vmatmul.mubr.msk.bf16.gmra.mxu0 %vm828_vm2, %v3871_v14 }
 0x5b9   : > { %2259 = vmatprep.mubr.bf16.mxu0 %v5231_v5 }
 0x5c0   : > { %3118 = vmatmul.mubr.msk.bf16.gmra.mxu0 %vm828_vm2, %v3872_v2 }
 0x5c1   : > { %2269 = vmatprep.mubr.bf16.mxu0 %v5231_v5 }
 0x5c8   : > { %3119 = vmatmul.mubr.msk.bf16.gmra.mxu0 %vm828_vm2, %v3873_v22 }
 0x5c9   : > { %2279 = vmatprep.mubr.bf16.mxu0 %v5231_v5 }
 0x5d0   : > { %3120 = vmatmul.mubr.msk.bf16.gmra.mxu0 %vm828_vm2, %v3874_v50 }
 0x615   : > { %v2301_v31 = vpop.xlane.xlu0 %2300 }
 0x616   : > { %v2305_v0 = vmul.f32 0.00390625, %v2301_v31 }
 0x617   : > { %v2298_v17 = vpop.xlane.xlu1 %2297 }
 0x618   : > { %3294 = vmatprep.subr.mxu1 %v2305_v0  ;;  %v2304_v18 = vmul.f32 0.00390625, %v2298_v17 }
 0x619   : > { %3295 = vmatpush3.msra.mxu1 %v2305_v0  ;;  %v2295_v35 = vpop.xlane.xlu0 %2294 }
 0x61a   : > { %v2303_v21 = vmul.f32 0.00390625, %v2295_v35  ;;  %3296 = vmatprep.subr.mxu1 %v2304_v18 }
 0x61b   : > { %3297 = vmatpush3.msra.mxu1 %v2304_v18 }
 0x61c   : > { %3298 = vmatprep.subr.mxu1 %v2303_v21 }
 0x61d   : > { %v2292_v20 = vpop.xlane.xlu0 %2291  ;;  %3299 = vmatpush3.msra.mxu1 %v2303_v21 }
 0x61e   : > { %v2302_v28 = vmul.f32 0.00390625, %v2292_v20 }
 0x620   : > { %3300 = vmatprep.subr.mxu1 %v2302_v28 }
 0x621   : > { %3301 = vmatpush3.msra.mxu1 %v2302_v28 }
 0x622   : > { %3303 = vmatmul.mubr.msk.f32.vlgmr.msra.gmra.mxu1 %vm828_vm2, %v3875_v48 }
 0x623   : > { %3305 = vmatprep.mubr.msk.f32.mxu1 %vm828_vm2, %v3876_v54 }
 0x626   : > { %3306 = vmatmul.mubr.msk.f32.gmra.mxu1 %vm828_vm2, %v3877_v59 }
 0x627   : > { %3308 = vmatprep.mubr.msk.f32.mxu1 %vm828_vm2, %v3878_v55  ;;  %v2885_v55 = vld [vmem:[%s5047_s7] sm:$0xff] }
 0x62a   : > { %3309 = vmatmul.mubr.msk.f32.gmra.mxu1 %vm828_vm2, %v3879_v29 }
 0x62b   : > { %3311 = vmatprep.mubr.msk.f32.mxu1 %vm828_vm2, %v3880_v40 }
 0x62e   : > { %3312 = vmatmul.mubr.msk.f32.gmra.mxu1 %vm828_vm2, %v3881_v47 }
 0x62f   : > { %3314 = vmatprep.mubr.msk.f32.mxu1 %vm828_vm2, %v3882_v56 }
 0x632   : > { %3315 = vmatmul.mubr.msk.f32.gmra.mxu1 %vm828_vm2, %v3883_v1 }
 0x633   : > { %3317 = vmatprep.mubr.msk.f32.mxu1 %vm828_vm2, %v3884_v44 }
 0x636   : > { %3318 = vmatmul.mubr.msk.f32.gmra.mxu1 %vm828_vm2, %v3885_v63 }
 0x637   : > { %3320 = vmatprep.mubr.msk.f32.mxu1 %vm828_vm2, %v3886_v23 }
 0x63a   : > { %3321 = vmatmul.mubr.msk.f32.gmra.mxu1 %vm828_vm2, %v3887_v13 }
 0x63b   : > { %3323 = vmatprep.mubr.msk.f32.mxu1 %vm828_vm2, %v3888_v46 }
 0x63e   : > { %3324 = vmatmul.mubr.msk.f32.gmra.mxu1 %vm828_vm2, %v3889_v24 }
 0x63f   : > { %2832 = vmatprep.mubr.bf16.mxu1 %v5231_v5 }
 0x658   : > { %v2211_v29 = vpop.f32.mrf.mxu0 }
 0x65a   : > { %v2213_v40 = vpop.f32.mrf.mxu0 }
 0x65c   : > { %v2215_v47 = vpop.f32.mrf.mxu0 }
 0x65e   : > { %v2217_v56 = vpop.f32.mrf.mxu0 }
 0x660   : > { %v2221_v1 = vpop.f32.mrf.mxu0 }
 0x661   : > { %v2455_v27 = vadd.f32 %v2221_v1, %v4133_v37 }
 0x662   : > { %v2223_v44 = vpop.f32.mrf.mxu0 }
 0x664   : > { %v2225_v63 = vpop.f32.mrf.mxu0 }
 0x665   : > { %v2457_v33 = vadd.f32 %v2225_v63, %v5212_v43 }
 0x666   : > { %v2227_v23 = vpop.f32.mrf.mxu0 }
 0x668   : > { %v2231_v13 = vpop.f32.mrf.mxu0 }
 0x669   : > { %v2459_v37 = vadd.f32 %v2231_v13, %v4498_v53 }
 0x66a   : > { %v4877_v46 = vpop.f32.mrf.mxu0 }
 0x66c   : > { %v4879_v24 = vpop.f32.mrf.mxu0 }
 0x6e2   : > { %v3304_v45 = vpop.f32.mrf.mxu1 }
 0x6e3   : > { %2490 = vperm.xlu1 %3369, %v3304_v45   ;;  %v4881_v45 = vpop.f32.mrf.mxu0 }
 0x6e4   : > { %v2372_v14 = vpop.f32.mrf.mxu1 }
 0x6e5   : > { %2485 = vperm.xlu0 %3368, %v2372_v14   ;;  %v2241_v14 = vpop.f32.mrf.mxu0 }
 0x6e6   : > { %v3307_v2 = vpop.f32.mrf.mxu1 }
 0x6e8   : > { %v2382_v22 = vpop.f32.mrf.mxu1 }
 0x6e9   : > { %2500 = vperm.xlu0 %3368, %v3307_v2   ;;  %2495 = vperm.xlu1 %3369, %v2382_v22   ;;  %v2243_v2 = vpop.f32.mrf.mxu0 }
 0x6ea   : > { %v3310_v50 = vpop.f32.mrf.mxu1 }
 0x6eb   : > { %v2245_v22 = vpop.f32.mrf.mxu0 }
 0x6ec   : > { %v2392_v31 = vpop.f32.mrf.mxu1 }
 0x6ed   : > { %2505 = vperm.xlu0 %3368, %v2392_v31  }
 0x6ee   : > { %v3313_v0 = vpop.f32.mrf.mxu1 }
 0x6ef   : > { %2520 = vperm.xlu1 %3369, %v3313_v0  }
 0x6f0   : > { %v2402_v17 = vpop.f32.mrf.mxu1 }
 0x6f2   : > { %v3316_v18 = vpop.f32.mrf.mxu1 }
 0x6f3   : > { %2515 = vperm.xlu1 %3369, %v2402_v17  }
 0x6f4   : > { %v2412_v35 = vpop.f32.mrf.mxu1 }
 0x6f5   : > { %2525 = vperm.xlu0 %3368, %v2412_v35  }
 0x6f6   : > { %v3319_v21 = vpop.f32.mrf.mxu1 }
 0x6f7   : > { %2510 = vperm.xlu1 %3369, %v3310_v50   ;;  %v2247_v50 = vpop.f32.mrf.mxu0 }
 0x6f8   : > { %v2422_v20 = vpop.f32.mrf.mxu1 }
 0x6f9   : > { %2535 = vperm.xlu0 %3368, %v2422_v20   ;;  %v4883_v31 = vpop.f32.mrf.mxu0  ;;  %v2454_v20 = vadd.f32 %v2217_v56, %v4168_v3 }
 0x6fa   : > { %v3322_v28 = vpop.f32.mrf.mxu1 }
 0x6fb   : > { %2530 = vperm.xlu1 %3369, %v3316_v18   ;;  %v4885_v0 = vpop.f32.mrf.mxu0 }
 0x6fc   : > { %v2432_v48 = vpop.f32.mrf.mxu1 }
 0x6fd   : > { %v4887_v17 = vpop.f32.mrf.mxu0 }
 0x6fe   : > { %v3325_v54 = vpop.f32.mrf.mxu1 }
 0x6ff   : > { %2540 = vperm.xlu1 %3369, %v3319_v21   ;;  %v4889_v18 = vpop.f32.mrf.mxu0  ;;  %v2453_v21 = vadd.f32 %v2215_v47, %v4159_v58  ;;  %v2458_v58 = vadd.f32 %v2227_v23, %v5213_v61 }
 0x700   : > { %v2442_v59 = vpop.f32.mrf.mxu1 }
 0x701   : > { %2555 = vperm.xlu0 %3368, %v2442_v59   ;;  %v4891_v35 = vpop.f32.mrf.mxu0 }
 0x703   : > { %2560 = vperm.xlu1 %3369, %v3325_v54   ;;  %v2452_v54 = vadd.f32 %v2213_v40, %v4135_v39  ;;  %v4897_v59 = vpop.f32.mrf.mxu0 }
 0x705   : > { %2545 = vperm.xlu0 %3368, %v2432_v48   ;;  %v2451_v48 = vadd.f32 %v2211_v29, %v4131_v36  ;;  %v4902_v3 = vpop.f32.mrf.mxu0  ;;  %v5232_v36 = vld [vmem:[#allocation6_spill] sm:$0xff] }
 0x706   : > { %v2456_v29 = vadd.f32 %v2223_v44, %v5232_v36 }
 0x707   : > { %2550 = vperm.xlu1 %3369, %v3322_v28   ;;  %v4906_v1 = vpop.f32.mrf.mxu0 }
 0x709   : > { %2888 = vperm.xlu0 %3368, %v2885_v55  }
 0x75e   : > { %v2491_v28 = vpop.permute.xlu1 %2490 }
 0x75f   : > { %v2565_v55 = vadd.f32 %v2491_v28, %v2453_v21  ;;  %v2566_v5 = vadd.f32 %v2491_v28, %v2454_v20 }
 0x760   : > { %v2486_v12 = vpop.permute.xlu0 %2485 }
 0x761   : > { %v2563_v9 = vadd.f32 %v2486_v12, %v2451_v48  ;;  %v2564_v11 = vadd.f32 %v2486_v12, %v2452_v54  ;;  %v3147_v42 = vmul.f32 -1.442695, %v2565_v55  ;;  %v3148_v47 = vmul.f32 -1.442695, %v2566_v5 }
 0x762   : > { %v2463_v54 = vadd.f32 %v2241_v14, %v4486_v25 }
 0x763   : > { %v3145_v39 = vmul.f32 -1.442695, %v2563_v9  ;;  %v3146_v21 = vmul.f32 -1.442695, %v2564_v11  ;;  %3739 = vpow2.f32 %v3147_v42  ;;  %v2465_v9 = vadd.f32 %v2245_v22, %v4477_v7  ;;  %v4910_v42 = vpop.f32.mrf.mxu0 }
 0x764   : > { %v2501_v40 = vpop.permute.xlu0 %2500  ;;  %v2496_v56 = vpop.permute.xlu1 %2495  ;;  %3741 = vpow2.f32 %v3148_v47  ;;  %v2464_v7 = vadd.f32 %v2243_v2, %v4489_v26 }
 0x765   : > { %v2569_v20 = vadd.f32 %v2501_v40, %v2457_v33  ;;  %v2570_v28 = vadd.f32 %v2501_v40, %v2458_v58  ;;  %v2567_v48 = vadd.f32 %v2496_v56, %v2455_v27  ;;  %v2568_v12 = vadd.f32 %v2496_v56, %v2456_v29 }
 0x766   : > { %3743 = vpow2.f32 %v3145_v39  ;;  %v2466_v33 = vadd.f32 %v2247_v50, %v4480_v60  ;;  %v2460_v60 = vadd.f32 %v4877_v46, %v4501_v8  ;;  %v4916_v50 = vpop.f32.mrf.mxu0 }
 0x767   : > { %v3151_v43 = vmul.f32 -1.442695, %v2569_v20  ;;  %v3152_v61 = vmul.f32 -1.442695, %v2570_v28  ;;  %v3149_v5 = vmul.f32 -1.442695, %v2567_v48  ;;  %3745 = vpow2.f32 %v3146_v21 }
 0x768   : > { %v2506_v63 = vpop.permute.xlu0 %2505  ;;  %v3150_v44 = vmul.f32 -1.442695, %v2568_v12  ;;  %v4918_v40 = vpop.f32.mrf.mxu0 }
 0x769   : > { %v2571_v11 = vadd.f32 %v2506_v63, %v2459_v37  ;;  %3747 = vpow2.f32 %v3151_v43  ;;  %v2572_v29 = vadd.f32 %v2506_v63, %v2460_v60 }
 0x76a   : > { %v2521_v27 = vpop.permute.xlu1 %2520  ;;  %3749 = vpow2.f32 %v3152_v61  ;;  %v4922_v48 = vpop.f32.mrf.mxu0 }
 0x76b   : > { %v3137_v53 = vmul.f32 -1.442695, %v2571_v11  ;;  %v2577_v23 = vadd.f32 %v2521_v27, %v2465_v9  ;;  %3751 = vpow2.f32 %v3149_v5  ;;  %v2578_v13 = vadd.f32 %v2521_v27, %v2466_v33  ;;  %v5233_v27 = vld [vmem:[#allocation50_spill] sm:$0xff] }
 0x76c   : > { %3753 = vpow2.f32 %v3150_v44  ;;  %v3138_v21 = vmul.f32 -1.442695, %v2572_v29  ;;  %v2461_v5 = vadd.f32 %v4879_v24, %v4466_v49 }
 0x76d   : > { %v3143_v55 = vmul.f32 -1.442695, %v2577_v23  ;;  %3755 = vpow2.f32 %v3137_v53  ;;  %v3144_v47 = vmul.f32 -1.442695, %v2578_v13  ;;  %v2462_v53 = vadd.f32 %v4881_v45, %v5233_v27  ;;  %v2281_v23 = vpop.f32.mrf.mxu0 }
 0x76e   : > { %v2516_v22 = vpop.permute.xlu1 %2515 }
 0x76f   : > { %v2575_v58 = vadd.f32 %v2516_v22, %v2463_v54  ;;  %3757 = vpow2.f32 %v3143_v55  ;;  %v2576_v36 = vadd.f32 %v2516_v22, %v2464_v7  ;;  %v2471_v7 = vadd.f32 %v4891_v35, %v4189_v32 }
 0x770   : > { %v3740_v39 = vpop.eup %3739  ;;  %3759 = vpow2.f32 %v3144_v47  ;;  %v4920_v20 = vpop.permute.xlu0 %2525  ;;  %v2472_v22 = vadd.f32 %v4897_v59, %v4195_v41  ;;  %v2473_v35 = vadd.f32 %v4902_v3, %v4200_v51  ;;  %v2474_v41 = vadd.f32 %v4906_v1, %v4207_v62 }
 0x771   : > { %v3141_v25 = vmul.f32 -1.442695, %v2575_v58  ;;  %v3742_v14 = vpop.eup %3741  ;;  %v3142_v56 = vmul.f32 -1.442695, %v2576_v36  ;;  %v2685_v46 = vadd.f32 1.0, %v3740_v39  ;;  %v2283_v36 = vpop.f32.mrf.mxu0  ;;  %v2467_v62 = vadd.f32 %v4883_v31, %v5165_v52 }
 0x772   : > { %v2511_v26 = vpop.permute.xlu1 %2510  ;;  %v2686_v12 = vadd.f32 1.0, %v3742_v14  ;;  %v2479_v1 = vadd.f32 %v2281_v23, %v4170_v4  ;;  %v2469_v52 = vadd.f32 %v4887_v17, %v4187_v30 }
 0x773   : > { %v3744_v2 = vpop.eup %3743  ;;  %3761 = vpow2.f32 %v3141_v25  ;;  %v2573_v54 = vadd.f32 %v2511_v26, %v2461_v5  ;;  %v2574_v58 = vadd.f32 %v2511_v26, %v2462_v53  ;;  %v2285_v26 = vpop.f32.mrf.mxu0 }
 0x774   : > { %v3746_v8 = vpop.eup %3745  ;;  %v2683_v43 = vadd.f32 1.0, %v3744_v2  ;;  %3763 = vpow2.f32 %v3142_v56  ;;  %v2536_v55 = vpop.permute.xlu0 %2535  ;;  %v2481_v4 = vadd.f32 %v2285_v26, %v4176_v10 }
 0x775   : > { %v2684_v63 = vadd.f32 1.0, %v3746_v8  ;;  %3765 = vpow2.f32 %v3138_v21  ;;  %v2583_v45 = vadd.f32 %v2536_v55, %v2471_v7  ;;  %v3139_v29 = vmul.f32 -1.442695, %v2573_v54  ;;  %v2287_v5 = vpop.f32.mrf.mxu0 }
 0x776   : > { %v3748_v28 = vpop.eup %3747  ;;  %3767 = vrcp.f32 %v2685_v46  ;;  %v4926_v11 = vpop.permute.xlu1 %2530  ;;  %v2584_v39 = vadd.f32 %v2536_v55, %v2472_v22  ;;  %v3140_v56 = vmul.f32 -1.442695, %v2574_v58  ;;  %v2482_v54 = vadd.f32 %v2287_v5, %v4180_v15 }
 0x777   : > { %v3750_v37 = vpop.eup %3749  ;;  %v2689_v44 = vadd.f32 1.0, %v3748_v28  ;;  %3769 = vrcp.f32 %v2686_v12  ;;  %v3157_v59 = vmul.f32 -1.442695, %v2583_v45  ;;  %v2470_v55 = vadd.f32 %v4889_v18, %v4192_v34 }
 0x778   : > { %v3752_v61 = vpop.eup %3751  ;;  %v2690_v13 = vadd.f32 1.0, %v3750_v37  ;;  %3771 = vrcp.f32 %v2683_v43  ;;  %v3158_v2 = vmul.f32 -1.442695, %v2584_v39  ;;  %v2581_v17 = vadd.f32 %v4926_v11, %v2469_v52 }
 0x779   : > { %v3754_v9 = vpop.eup %3753  ;;  %v2687_v49 = vadd.f32 1.0, %v3752_v61  ;;  %3773 = vrcp.f32 %v2684_v63  ;;  %v2582_v22 = vadd.f32 %v4926_v11, %v2470_v55  ;;  %v2476_v11 = vadd.f32 %v4916_v50, %v5170_v6 }
 0x77a   : > { %v3756_v33 = vpop.eup %3755  ;;  %v2688_v60 = vadd.f32 1.0, %v3754_v9  ;;  %3775 = vrcp.f32 %v2689_v44  ;;  %v2541_v14 = vpop.permute.xlu1 %2540  ;;  %v2468_v44 = vadd.f32 %v4885_v0, %v5214_v57  ;;  %v2579_v57 = vadd.f32 %v4920_v20, %v2467_v62 }
 0x77b   : > { %v2619_v47 = vadd.f32 1.0, %v3756_v33  ;;  %3777 = vrcp.f32 %v2690_v13  ;;  %v2585_v21 = vadd.f32 %v2541_v14, %v2473_v35  ;;  %v2586_v28 = vadd.f32 %v2541_v14, %v2474_v41 }
 0x77c   : > { %v3758_v24 = vpop.eup %3757  ;;  %3779 = vrcp.f32 %v2687_v49  ;;  %v2556_v3 = vpop.permute.xlu0 %2555  ;;  %v2480_v33 = vadd.f32 %v2283_v36, %v5215_v38  ;;  %v2580_v7 = vadd.f32 %v4920_v20, %v2468_v44  ;;  %v3153_v58 = vmul.f32 -1.442695, %v2579_v57  ;;  %v5238_v57 = vld [vmem:[#allocation20_spill] sm:$0xff] }
 0x77d   : > { %v2625_v25 = vadd.f32 1.0, %v3758_v24  ;;  %v3760_v32 = vpop.eup %3759  ;;  %3781 = vrcp.f32 %v2688_v60  ;;  %v3159_v63 = vmul.f32 -1.442695, %v2585_v21  ;;  %v3160_v27 = vmul.f32 -1.442695, %v2586_v28  ;;  %v5235_v28 = vld [vmem:[#allocation14_spill] sm:$0xff] }
 0x77e   : > { %3783 = vrcp.f32 %v2619_v47  ;;  %v2626_v46 = vadd.f32 1.0, %v3760_v32  ;;  %v2561_v53 = vpop.permute.xlu1 %2560  ;;  %v2591_v31 = vadd.f32 %v2556_v3, %v2479_v1  ;;  %v2592_v38 = vadd.f32 %v2556_v3, %v2480_v33 }
 0x77f   : > { %3785 = vpow2.f32 %v3139_v29  ;;  %v2593_v30 = vadd.f32 %v2561_v53, %v2481_v4  ;;  %v2594_v49 = vadd.f32 %v2561_v53, %v2482_v54  ;;  %v3154_v34 = vmul.f32 -1.442695, %v2580_v7  ;;  %v5234_v29 = vld [vmem:[#allocation12_spill] sm:$0xff] }
 0x780   : > { %v3762_v8 = vpop.eup %3761  ;;  %3787 = vrcp.f32 %v2625_v25  ;;  %v3155_v20 = vmul.f32 -1.442695, %v2581_v17  ;;  %v2546_v45 = vpop.permute.xlu0 %2545  ;;  %v2475_v39 = vadd.f32 %v4910_v42, %v5234_v29  ;;  %v3156_v25 = vmul.f32 -1.442695, %v2582_v22 }
 0x781   : > { %v3764_v12 = vpop.eup %3763  ;;  %v2623_v37 = vadd.f32 1.0, %v3762_v8  ;;  %3789 = vpow2.f32 %v3140_v56 }
 0x782   : > { %v3766_v43 = vpop.eup %3765  ;;  %v2624_v51 = vadd.f32 1.0, %v3764_v12  ;;  %3791 = vpow2.f32 %v3157_v59  ;;  %v2587_v56 = vadd.f32 %v2546_v45, %v2475_v39  ;;  %v2588_v59 = vadd.f32 %v2546_v45, %v2476_v11  ;;  %v2551_v8 = vpop.permute.xlu1 %2550 }
 0x783   : > { %v4938_v61 = vpop.eup %3767  ;;  %3793 = vpow2.f32 %v3158_v2  ;;  %v2620_v24 = vadd.f32 1.0, %v3766_v43  ;;  %v2477_v12 = vadd.f32 %v4918_v40, %v5235_v28 }
 0x784   : > { %v4943_v9 = vpop.eup %3769  ;;  %3795 = vrcp.f32 %v2626_v46 }
 0x785   : > { %v4948_v13 = vpop.eup %3771  ;;  %3797 = vrcp.f32 %v2623_v37  ;;  %v5236_v37 = vld [vmem:[#allocation15_spill] sm:$0xff]  ;;  %v2589_v3 = vadd.f32 %v2551_v8, %v2477_v12 }
 0x786   : > { %v4953_v23 = vpop.eup %3773  ;;  %3799 = vrcp.f32 %v2624_v51  ;;  %v2478_v43 = vadd.f32 %v4922_v48, %v5236_v37  ;;  %v5237_v48 = vld [vmem:[#allocation21_spill] sm:$0xff] }
 0x787   : > { %v4957_v0 = vpop.eup %3775  ;;  %3801 = vpow2.f32 %v3159_v63 }
 0x788   : > { %v4962_v10 = vpop.eup %3777  ;;  %3803 = vpow2.f32 %v3160_v27  ;;  %v2590_v63 = vadd.f32 %v2551_v8, %v2478_v43 }
 0x789   : > { %v3780_v15 = vpop.eup %3779  ;;  %3805 = vtanh.f32 %v2591_v31 }
 0x78a   : > { %v3782_v60 = vpop.eup %3781  ;;  %3807 = vtanh.f32 %v2592_v38 }
 0x78b   : > { %v4966_v47 = vpop.eup %3783  ;;  %3809 = vtanh.f32 %v2593_v30 }
 0x78c   : > { %v3786_v18 = vpop.eup %3785  ;;  %3811 = vtanh.f32 %v2594_v49 }
 0x78d   : > { %v3788_v36 = vpop.eup %3787  ;;  %3813 = vrcp.f32 %v2620_v24  ;;  %v2621_v32 = vadd.f32 1.0, %v3786_v18 }
 0x78e   : > { %v3790_v14 = vpop.eup %3789  ;;  %3815 = vpow2.f32 %v3153_v58  ;;  %v2649_v4 = vmul.f32 %v3788_v36, %v5237_v48 }
 0x78f   : > { %v3792_v35 = vpop.eup %3791  ;;  %3817 = vpow2.f32 %v3154_v34  ;;  %v2622_v2 = vadd.f32 1.0, %v3790_v14  ;;  %v5239_v14 = vld [vmem:[#allocation24_spill] sm:$0xff] }
 0x790   : > { %v3794_v41 = vpop.eup %3793  ;;  %3819 = vpow2.f32 %v3155_v20  ;;  %v2751_v42 = vadd.f32 1.0, %v3792_v35  ;;  %v2643_v11 = vmul.f32 %v4966_v47, %v5239_v14 }
 0x791   : > { %v3796_v26 = vpop.eup %3795  ;;  %3821 = vpow2.f32 %v3156_v25  ;;  %v2752_v6 = vadd.f32 1.0, %v3794_v41 }
 0x792   : > { %v3798_v21 = vpop.eup %3797  ;;  %3823 = vrcp.f32 %v2621_v32  ;;  %v2650_v38 = vmul.f32 %v3796_v26, %v5238_v57  ;;  %v5241_v26 = vld [vmem:[#allocation16_spill] sm:$0xff] }
 0x793   : > { %v3800_v46 = vpop.eup %3799  ;;  %3825 = vtanh.f32 %v2587_v56  ;;  %v2647_v62 = vmul.f32 %v3798_v21, %v4758_v16  ;;  %v5240_v56 = vld [vmem:[#allocation25_spill] sm:$0xff] }
 0x794   : > { %v3802_v50 = vpop.eup %3801  ;;  %3827 = vtanh.f32 %v2588_v59  ;;  %v2648_v44 = vmul.f32 %v3800_v46, %v4761_v19 }
 0x795   : > { %v3804_v51 = vpop.eup %3803  ;;  %3829 = vrcp.f32 %v2622_v2  ;;  %v2753_v30 = vadd.f32 1.0, %v3802_v50 }
 0x796   : > { %v3806_v1 = vpop.eup %3805  ;;  %3831 = vrcp.f32 %v2751_v42  ;;  %v2754_v5 = vadd.f32 1.0, %v3804_v51 }
 0x797   : > { %v3808_v33 = vpop.eup %3807  ;;  %3833 = vrcp.f32 %v2752_v6  ;;  %v2711_v40 = vmul.f32 %v3806_v1, %v3780_v15 }
 0x798   : > { %v3810_v27 = vpop.eup %3809  ;;  %3835 = vrcp.f32 %v2754_v5  ;;  %v2712_v53 = vmul.f32 %v3808_v33, %v3782_v60 }
 0x799   : > { %v3812_v52 = vpop.eup %3811  ;;  %3837 = vtanh.f32 %v2589_v3  ;;  %v2713_v31 = vmul.f32 %v3810_v27, %v4957_v0  ;;  %v2719_v54 = vadd.f32 %v2711_v40, %v2647_v62 }
 0x79a   : > { %v3814_v16 = vpop.eup %3813  ;;  %3839 = vtanh.f32 %v2590_v63  ;;  %v2714_v55 = vmul.f32 %v3812_v52, %v4962_v10  ;;  %v2720_v19 = vadd.f32 %v2712_v53, %v2648_v44  ;;  %v5243_v52 = vmov 0  }
 0x79b   : > { %v3816_v7 = vpop.eup %3815  ;;  %v2721_v17 = vadd.f32 %v2713_v31, %v2649_v4  ;;  %3841 = vtanh.f32 %v2719_v54  ;;  %v2644_v41 = vmul.f32 %v3814_v16, %v5240_v56 }
 0x79c   : > { %v3818_v49 = vpop.eup %3817  ;;  %v2722_v15 = vadd.f32 %v2714_v55, %v2650_v38  ;;  %3843 = vtanh.f32 %v2720_v19  ;;  %v2747_v10 = vadd.f32 1.0, %v3816_v7 }
 0x79d   : > { %v3820_v24 = vpop.eup %3819  ;;  %3845 = vtanh.f32 %v2721_v17  ;;  %v2795_v22 = vpack.c.bf16 %v2721_v17, %v2719_v54  ;;  %v2748_v36 = vadd.f32 1.0, %v3818_v49  ;;  %v2787_v49 = vld [vmem:[%s5045_s5] sm:$0xf] }
 0x79e   : > { %v3822_v60 = vpop.eup %3821  ;;  %3847 = vtanh.f32 %v2722_v15  ;;  %v2796_v0 = vpack.c.bf16 %v2722_v15, %v2720_v19  ;;  %v2749_v25 = vadd.f32 1.0, %v3820_v24 }
 0x79f   : > { %v3824_v58 = vpop.eup %3823  ;;  %3849 = vrcp.f32 %v2753_v30  ;;  %v2750_v35 = vadd.f32 1.0, %v3822_v60 }
 0x7a0   : > { %v3826_v34 = vpop.eup %3825  ;;  %2812 = vmatprep.subr.bf16.mxu1 %v2796_v0  ;;  %3851 = vrcp.f32 %v2747_v10  ;;  %v2645_v2 = vmul.f32 %v3824_v58, %v5241_v26 }
 0x7a1   : > { %v3828_v18 = vpop.eup %3827  ;;  %2813 = vmatpush1.bf16.msra.mxu1 %v2795_v22  ;;  %v2707_v20 = vmul.f32 %v3826_v34, %v4948_v13  ;;  %3853 = vrcp.f32 %v2748_v36  ;;  %v5242_v13 = vld [vmem:[#allocation17_spill] sm:$0xff]  ;;  %v2889_v34 = vpop.permute.xlu0 %2888 }
 0x7a2   : > { %v3830_v45 = vpop.eup %3829  ;;  %v2708_v29 = vmul.f32 %v3828_v18, %v4953_v23  ;;  %3855 = vrcp.f32 %v2749_v25 }
 0x7a3   : > { %v3832_v39 = vpop.eup %3831  ;;  %v2715_v21 = vadd.f32 %v2707_v20, %v2643_v11  ;;  %v2646_v8 = vmul.f32 %v3830_v45, %v5242_v13  ;;  %3857 = vrcp.f32 %v2750_v35 }
 0x7a4   : > { %v3834_v32 = vpop.eup %3833  ;;  %v2716_v46 = vadd.f32 %v2708_v29, %v2644_v41 }
 0x7a5   : > { %v3836_v59 = vpop.eup %3835  ;;  %3859 = vtanh.f32 %v2715_v21 }
 0x7a6   : > { %v3838_v42 = vpop.eup %3837  ;;  %3861 = vtanh.f32 %v2716_v46 }
 0x7a7   : > { %v3840_v23 = vpop.eup %3839  ;;  %v2709_v28 = vmul.f32 %v3838_v42, %v4938_v61 }
 0x7a8   : > { %v3842_v12 = vpop.eup %3841  ;;  %v2710_v47 = vmul.f32 %v3840_v23, %v4943_v9  ;;  %v2792_v9 = vld [vmem:[%s5046_s6] sm:$0xf] }
 0x7a9   : > { %v3844_v6 = vpop.eup %3843  ;;  %v2717_v50 = vadd.f32 %v2709_v28, %v2645_v2  ;;  %v2783_v1 = vmul.f32 %v3842_v12, %v3832_v39 }
 0x7aa   : > { %v3846_v37 = vpop.eup %3845  ;;  %v2718_v43 = vadd.f32 %v2710_v47, %v2646_v8  ;;  %v2784_v51 = vmul.f32 %v3844_v6, %v3834_v32 }
 0x7ab   : > { %v3848_v3 = vpop.eup %3847  ;;  %3863 = vtanh.f32 %v2717_v50  ;;  %v2793_v62 = vpack.c.bf16 %v2717_v50, %v2715_v21 }
 0x7ac   : > { %v3850_v5 = vpop.eup %3849  ;;  %3865 = vtanh.f32 %v2718_v43  ;;  %v2794_v63 = vpack.c.bf16 %v2718_v43, %v2716_v46  ;;  %v2786_v44 = vmul.f32 %v3848_v3, %v3836_v59 }
 0x7ad   : > { %v2785_v61 = vmul.f32 %v3850_v5, %v3846_v37  ;;  %v3852_v27 = vpop.eup %3851 }
 0x7ae   : > { %2814 = vmatprep.subr.bf16.mxu1 %v2794_v63  ;;  %v2791_v33 = vpack.c.bf16 %v2786_v44, %v2784_v51  ;;  %v3854_v53 = vpop.eup %3853 }
 0x7af   : > { %2815 = vmatpush1.bf16.msra.mxu1 %v2793_v62  ;;  %v2790_v40 = vpack.c.bf16 %v2785_v61, %v2783_v1  ;;  %v3856_v48 = vpop.eup %3855 }
 0x7b0   : > { %2856 = vmatprep.subr.bf16.mxu1 %v2791_v33  ;;  %v3858_v4 = vpop.eup %3857 }
 0x7b2   : > { %3161 = vmatmul.mubr.msk.bf16.vlgmr.msra.gmra.mxu1 %vm828_vm2, %v2792_v9  ;;  %v3860_v31 = vpop.eup %3859 }
 0x7b3   : > { %2857 = vmatpush1.bf16.msra.mxu1 %v2790_v40  ;;  %2876 = vmatprep.mubr.bf16.mxu1 %v5243_v52  ;;  %v3862_v54 = vpop.eup %3861  ;;  %v2779_v38 = vmul.f32 %v3860_v31, %v3852_v27 }
 0x7b4   : > { %v2780_v19 = vmul.f32 %v3862_v54, %v3854_v53 }
 0x7b8   : > { %v3864_v16 = vpop.eup %3863 }
 0x7b9   : > { %v3866_v57 = vpop.eup %3865  ;;  %v2781_v55 = vmul.f32 %v3864_v16, %v3856_v48 }
 0x7ba   : > { %v2782_v7 = vmul.f32 %v3866_v57, %v3858_v4 }
 0x7bb   : > { %v2788_v30 = vpack.c.bf16 %v2781_v55, %v2779_v38 }
 0x7bc   : > { %v2789_v17 = vpack.c.bf16 %v2782_v7, %v2780_v19 }
 0x7be   : > { %2858 = vmatprep.subr.bf16.mxu1 %v2789_v17 }
 0x7bf   : > { %2859 = vmatpush1.bf16.msra.mxu1 %v2788_v30 }
 0x7c2   : > { %3162 = vmatmul.mubr.msk.bf16.vlgmr.msra.gmra.mxu1 %vm828_vm2, %v2787_v49 }
 0x872   : > { %v2834_v15 = vpop.f32.mrf.mxu1 }
 0x874   : > { %v2836_v24 = vpop.f32.mrf.mxu1 }
 0x876   : > { %v2838_v22 = vpop.f32.mrf.mxu1 }
 0x878   : > { %v2839_v60 = vpop.f32.mrf.mxu1 }
 0x882   : > { %v2878_v0 = vpop.f32.mrf.mxu1 }
 0x883   : > { %v2879_v58 = vadd.f32 %v2878_v0, %v2834_v15 }
 0x884   : > { %v2880_v18 = vpop.f32.mrf.mxu1 }
 0x885   : > { %v2891_v10 = vadd.f32 %v2889_v34, %v2879_v58  ;;  %v2881_v20 = vadd.f32 %v2880_v18, %v2836_v24 }
 0x886   : > { %v2882_v45 = vpop.f32.mrf.mxu1 }
 0x887   : > { %2893 = vst [vmem:[%s298_s17] sm:$0xff] %v2891_v10  ;;  %v2892_v36 = vadd.f32 %v2889_v34, %v2881_v20 }
 0x888   : > { %v2883_v29 = vpop.f32.mrf.mxu1 }
 0x889   : > { %2894 = vst [vmem:[%s298_s17 + $0x8] sm:$0xff] %v2892_v36 }
 0x88a   : > { %3903 = shalt.err (!%p3900_p3)
}
 0x88b   : > { %s3904_s26 = scalar_lea.hbm %s5005_s21, 256  ;;  %s3908_s13 = scalar_lea.hbm %s5048_s8, 512 }
 0x88c   : > { %p3905_p4 = scmp.ne.s32.totalorder %s5005_s21, %s3904_s26  ;;  %p3909_p9 = scmp.lt.s32.totalorder %s5005_s21, %s5048_s8 }
 0x88d   : > { %p3910_p10 = scmp.lt.s32.totalorder %s3908_s13, %s3904_s26 }
 0x88e   : > { %p3906_p7 = pnand %p3905_p4, %p4037_p5 }
 0x88f   : > { %p3911_p11 = por %p3910_p10, %p3909_p9 }
 0x890   : > { %p3907_p8 = pneg %p3906_p7 }
 0x892   : > { %p3912_p12 = pnand %p3911_p11, %p3907_p8 }
 0x894   : > { %3915 = shalt.err (!%p3912_p12)
}
 0x895   : > { %3328 = dma.vmem_to_hbm [thread:$0]  (%p4037_p5), %s2911_s18, 256, %s5005_s21, %s2896_s22  }
 0x896 PF: > { %p3334_p13 = scmp.ge.s32.totalorder %s3950_s30, 2  ;;  %s2922_s20 = sand.u32 1, %s3938_s27  }
 0x897   : > { %s2923_s23 = scalar_lea.sflag [#allocation4], %s2922_s20 }
 0x898   : > { %p3331_p0 = pnand %p3334_p13, %p4041_p6 }
 0x89a   : > { %p3332_p1 = pneg %p3331_p0 }
 0x89c   : > { %3933 = dma.done.wait (%p3332_p1), %s2923_s23, 256  }
 0x89d   : > { %3935 = vsyncadd (%p3332_p1), %s2923_s23, 4294967040  ;;  %p18_p2 = scmp.ge.s32.totalorder %s4024_s11, 4   ;;  %s5244_s27 = smov %s3942_s28 }
 0x89e   : > { %s5245_s28 = smov %s3946_s29  ;;  %s5246_s29 = smov %s4035_s14 }
 0x89f   : > { %s5247_s30 = smov %s4024_s11  ;;  %20 = sbr.rel (!%p18_p2) target bundleno = 3 (0x3), region = 87 }
 0x8a4   :  { %2928 = vsyncpa [#allocation4], 1 }
 0x8a5   :  { %2930 = vsyncpa [#allocation4 + $0x1], 1 }

</bundles_post_ra>
